<compile_context>
chip_gen: v6e
topology: v6e:2x2x1
jax: 0.10.0
libtpu: 0.0.40
codegen_flags: <defaults>
</compile_context>

<pallas_src>
import jax
import jax.numpy as jnp
import numpy as np
from jax import lax
from jax.experimental import pallas as pl
from jax.experimental.pallas import tpu as pltpu

BN_EPS = 1e-5
LANE = 128
SUB = 8


def _round_up(n, m):
    return ((n + m - 1) // m) * m


def _pad2(a, rows, cols, dtype=None):
    """Zero-pad a 2-D array to (rows, cols), optionally casting."""
    dtype = a.dtype if dtype is None else dtype
    out = jnp.zeros((rows, cols), dtype)
    return out.at[: a.shape[0], : a.shape[1]].set(a.astype(dtype))


# ---------------------------------------------------------------------------
# Fused kernel: everything resident in VMEM, fori_loop over layers, then
# global_mean_pool + final Linear.  Runs once (no grid).
# ---------------------------------------------------------------------------
def gin_kernel(eps_ref,                      # [L]        SMEM f32
               x0_ref,                       # [Np, Hp]   f32   (encoded nodes)
               eemb_ref,                     # [Ep, Hp]   bf16  (encoded edges)
               gmat_ref,                     # [Ep, Np]   bf16  0/1 gather
               smat_ref,                     # [Np, Ep]   bf16  0/1 scatter-add
               w1_ref, b1_ref,               # [L,Hp,H2p] bf16 / [L,1,H2p] f32
               w2_ref, b2_ref,               # [L,H2p,Hp] bf16 / [L,1,Hp]  f32
               psum_ref,                     # [Gp, Np]   bf16  0/1 pool-sum
               invc_ref,                     # [Gp, 1]    f32   1/count
               wl_ref, bl_ref,               # [Hp, Cp]   bf16 / [1, Cp] f32
               o_ref):                       # [Gp, Cp]   f32
    num_layers = w1_ref.shape[0]
    eemb = eemb_ref[...].astype(jnp.float32)          # hoisted out of the loop

    def layer(l, h):                                   # h: [Np, Hp] f32 carry
        hb = h.astype(jnp.bfloat16)
        # message: gather x_j via one-hot matmul (MXU, bf16 operands, f32 acc)
        xj = jnp.dot(gmat_ref[...], hb, preferred_element_type=jnp.float32)
        msg = jnp.maximum(xj + eemb, 0.0)              # ReLU(x_j + e_ji)
        # aggregate: scatter-add via one-hot matmul
        agg = jnp.dot(smat_ref[...], msg.astype(jnp.bfloat16),
                      preferred_element_type=jnp.float32)
        # (1 + eps) * x_i + sum_j msg   (f32 combine)
        z = h * (1.0 + eps_ref[l]) + agg
        # MLP (eval BatchNorm already folded into w/b on the host)
        h1 = jnp.dot(z.astype(jnp.bfloat16), w1_ref[l],
                     preferred_element_type=jnp.float32) + b1_ref[l]
        h1 = jnp.maximum(h1, 0.0)
        h2 = jnp.dot(h1.astype(jnp.bfloat16), w2_ref[l],
                     preferred_element_type=jnp.float32) + b2_ref[l]
        # dropout(p=0.5, training=False) -> identity
        return jnp.maximum(h2, 0.0)

    h = lax.fori_loop(0, num_layers, layer, x0_ref[...], unroll=True)

    # global_mean_pool: exact 0/1 sum on the MXU, then f32 reciprocal scale.
    pooled = jnp.dot(psum_ref[...], h.astype(jnp.bfloat16),
                     preferred_element_type=jnp.float32) * invc_ref[...]
    # final Linear (lane-dense padded output, unmasked stores)
    o_ref[...] = jnp.dot(pooled.astype(jnp.bfloat16), wl_ref[...],
                         preferred_element_type=jnp.float32) + bl_ref[...]


def _gin_pallas(eps_arr, x0_p, eemb_p, gmat_p, smat_p,
                w1s, b1s, w2s, b2s, psum_p, invc_p, wl_p, bl_p):
    Gp, _ = psum_p.shape
    Cp = wl_p.shape[1]

    args = (eps_arr, x0_p, eemb_p, gmat_p, smat_p,
            w1s, b1s, w2s, b2s, psum_p, invc_p, wl_p, bl_p)

    # Derived VMEM budget: single copy of every operand (no pipelining /
    # double buffering) + headroom for in-loop temporaries; capped below the
    # v7x 64 MiB physical VMEM.
    footprint = sum(int(a.size) * a.dtype.itemsize for a in args) + Gp * Cp * 4
    vmem_limit = int(min(56 * 2**20, max(4 * footprint, 8 * 2**20)))

    vmem = pl.BlockSpec(memory_space=pltpu.MemorySpace.VMEM)
    smem = pl.BlockSpec(memory_space=pltpu.MemorySpace.SMEM)

    return pl.pallas_call(
        gin_kernel,
        out_shape=jax.ShapeDtypeStruct((Gp, Cp), jnp.float32),
        in_specs=[smem] + [vmem] * 12,
        out_specs=vmem,
        compiler_params=pltpu.CompilerParams(vmem_limit_bytes=vmem_limit),
    )(*args)


# ---------------------------------------------------------------------------
# Host-side glue: embedding encoders, eval-BN folding, lane-dense padding.
# ---------------------------------------------------------------------------
def encode(tables, feats):
    # tables: [F, V, H] ; feats: [R, F] int -> [R, H] (sum of column embeddings)
    out = jnp.zeros((feats.shape[0], tables.shape[-1]), jnp.float32)
    for f in range(tables.shape[0]):
        out = out + tables[f][feats[:, f]]
    return out


def fold_bn(w, b, bn):
    """Fold eval-mode BatchNorm (gamma,beta,mean,var rows) into Linear (w,b)."""
    gamma, beta, mean, var = bn[0], bn[1], bn[2], bn[3]
    scale = gamma * jax.lax.rsqrt(var + BN_EPS)
    return w * scale[None, :], (b - mean[None, :]) * scale[None, :] + beta[None, :]


def gin_forward(x_feats, edge_attr, gather_mat, scatter_mat, batch, num_graphs,
                atom_tables, bond_tables, eps_arr, conv_params, w_lin, b_lin):
    h0 = encode(atom_tables, x_feats)            # [N, H] f32
    e = encode(bond_tables, edge_attr)           # [E, H] f32

    N, H = h0.shape
    E = e.shape[0]
    G = int(num_graphs)
    C = w_lin.shape[1]

    # Lane-dense padded sizes.  Zero padding is exact: padded node/edge/graph
    # rows & columns of the 0/1 matrices and of the (BN-folded) weights are
    # all-zero, so they never contaminate real rows of the output.
    Hp = _round_up(H, LANE)
    H2p = _round_up(2 * H, LANE)
    Np = _round_up(N, LANE)
    Ep = _round_up(E, LANE)
    Gp = _round_up(G, SUB)
    Cp = _round_up(C, LANE)

    # Fold eval-mode BatchNorm into the MLP Linears, pad, stack per layer.
    w1s, b1s, w2s, b2s = [], [], [], []
    for (w1, b1, bn1, w2, b2, bn2) in conv_params:
        w1f, b1f = fold_bn(w1, b1, bn1)
        w2f, b2f = fold_bn(w2, b2, bn2)
        w1s.append(_pad2(w1f, Hp, H2p, jnp.bfloat16))
        b1s.append(_pad2(b1f, 1, H2p, jnp.float32))
        w2s.append(_pad2(w2f, H2p, Hp, jnp.bfloat16))
        b2s.append(_pad2(b2f, 1, Hp, jnp.float32))
    w1s = jnp.stack(w1s); b1s = jnp.stack(b1s)
    w2s = jnp.stack(w2s); b2s = jnp.stack(b2s)

    # Graph structure: exact 0/1 bf16 matrices.  Mean-pool = exact 0/1 sum
    # matmul + f32 reciprocal-count scale inside the kernel.
    gmat_p = _pad2(gather_mat, Ep, Np, jnp.bfloat16)
    smat_p = _pad2(scatter_mat, Np, Ep, jnp.bfloat16)
    batch_oh = jax.nn.one_hot(batch, G, dtype=jnp.float32)        # [N, G]
    counts = jnp.maximum(batch_oh.sum(axis=0), 1.0)               # [G]
    psum_p = _pad2(batch_oh.T, Gp, Np, jnp.bfloat16)              # [Gp, Np] 0/1
    invc_p = _pad2((1.0 / counts)[:, None], Gp, 1, jnp.float32)   # [Gp, 1]

    x0_p = _pad2(h0, Np, Hp, jnp.float32)                         # f32 carry init
    eemb_p = _pad2(e, Ep, Hp, jnp.bfloat16)

    wl_p = _pad2(w_lin, Hp, Cp, jnp.bfloat16)
    bl_p = _pad2(b_lin, 1, Cp, jnp.float32)

    out_p = _gin_pallas(eps_arr, x0_p, eemb_p, gmat_p, smat_p,
                        w1s, b1s, w2s, b2s, psum_p, invc_p, wl_p, bl_p)
    return out_p[:G, :C]


def gin_forward_reference(x_feats, edge_attr, gather_mat, scatter_mat, pool_mat,
                          atom_tables, bond_tables, eps_arr, conv_params,
                          w_lin, b_lin):
    """Pure-JAX f32 reference (unfolded BN, HIGHEST precision)."""
    hi = jax.lax.Precision.HIGHEST
    h = encode(atom_tables, x_feats)
    e = encode(bond_tables, edge_attr)
    for layer, (w1, b1, bn1, w2, b2, bn2) in enumerate(conv_params):
        xj = jnp.dot(gather_mat, h, precision=hi)
        msg = jnp.maximum(xj + e, 0.0)
        agg = jnp.dot(scatter_mat, msg, precision=hi)
        z = h * (1.0 + eps_arr[layer]) + agg
        z1 = jnp.dot(z, w1, precision=hi) + b1
        z1 = (z1 - bn1[2:3]) * jax.lax.rsqrt(bn1[3:4] + BN_EPS) * bn1[0:1] + bn1[1:2]
        z1 = jnp.maximum(z1, 0.0)
        z2 = jnp.dot(z1, w2, precision=hi) + b2
        z2 = (z2 - bn2[2:3]) * jax.lax.rsqrt(bn2[3:4] + BN_EPS) * bn2[0:1] + bn2[1:2]
        h = jnp.maximum(z2, 0.0)
    pooled = jnp.dot(pool_mat, h, precision=hi)
    return jnp.dot(pooled, w_lin, precision=hi) + b_lin


if __name__ == "__main__":
    # Small synthetic graph batch.
    N, E, H, C, G, L = 16, 32, 32, 8, 2, 3            # nodes, edges, hidden, out, graphs, layers
    NUM_ATOM_FEATS, ATOM_VOCAB = 9, 16
    NUM_BOND_FEATS, BOND_VOCAB = 3, 8

    key = jax.random.PRNGKey(0)
    ks = jax.random.split(key, 12)

    x_feats = jax.random.randint(ks[0], (N, NUM_ATOM_FEATS), 0, ATOM_VOCAB)
    edge_attr = jax.random.randint(ks[1], (E, NUM_BOND_FEATS), 0, BOND_VOCAB)
    src = jax.random.randint(ks[2], (E,), 0, N)        # message source j
    dst = jax.random.randint(ks[3], (E,), 0, N)        # message target i
    batch = jnp.concatenate([jnp.zeros(N // 2, jnp.int32),
                             jnp.ones(N - N // 2, jnp.int32)])

    # Densified graph structure (exact 0/1 values).
    gather_mat = jax.nn.one_hot(src, N, dtype=jnp.float32)          # [E, N]
    scatter_mat = jax.nn.one_hot(dst, N, dtype=jnp.float32).T       # [N, E]
    batch_oh = jax.nn.one_hot(batch, G, dtype=jnp.float32)          # [N, G]
    counts = jnp.maximum(batch_oh.sum(axis=0), 1.0)                 # [G]
    pool_mat = (batch_oh / counts[None, :]).T                       # [G, N] mean pool (reference)

    # Deterministic synthetic parameters.
    atom_tables = 0.1 * jax.random.normal(ks[4], (NUM_ATOM_FEATS, ATOM_VOCAB, H), jnp.float32)
    bond_tables = 0.1 * jax.random.normal(ks[5], (NUM_BOND_FEATS, BOND_VOCAB, H), jnp.float32)

    conv_params = []
    eps_vals = []
    for layer in range(L):
        kk = jax.random.split(ks[6 + layer], 12)
        w1 = 0.2 * jax.random.normal(kk[0], (H, 2 * H), jnp.float32)
        b1 = 0.05 * jax.random.normal(kk[1], (1, 2 * H), jnp.float32)
        bn1 = jnp.stack([
            1.0 + 0.1 * jax.random.normal(kk[2], (2 * H,)),          # gamma
            0.05 * jax.random.normal(kk[3], (2 * H,)),               # beta
            0.05 * jax.random.normal(kk[4], (2 * H,)),               # running_mean
            1.0 + 0.1 * jnp.abs(jax.random.normal(kk[5], (2 * H,))), # running_var
        ]).astype(jnp.float32)
        w2 = 0.2 * jax.random.normal(kk[6], (2 * H, H), jnp.float32)
        b2 = 0.05 * jax.random.normal(kk[7], (1, H), jnp.float32)
        bn2 = jnp.stack([
            1.0 + 0.1 * jax.random.normal(kk[8], (H,)),
            0.05 * jax.random.normal(kk[9], (H,)),
            0.05 * jax.random.normal(kk[10], (H,)),
            1.0 + 0.1 * jnp.abs(jax.random.normal(kk[11], (H,))),
        ]).astype(jnp.float32)
        conv_params.append((w1, b1, bn1, w2, b2, bn2))
        eps_vals.append(0.05 * (layer + 1))                          # train_eps=True value

    eps_arr = jnp.asarray(eps_vals, jnp.float32)                     # [L] -> SMEM

    w_lin = 0.2 * jax.random.normal(ks[9], (H, C), jnp.float32)
    b_lin = 0.05 * jax.random.normal(ks[10], (1, C), jnp.float32)

    out = gin_forward(x_feats, edge_attr, gather_mat, scatter_mat, batch, G,
                      atom_tables, bond_tables, eps_arr, conv_params, w_lin, b_lin)
    out = jax.block_until_ready(out)

    ref = gin_forward_reference(x_feats, edge_attr, gather_mat, scatter_mat, pool_mat,
                                atom_tables, bond_tables, eps_arr, conv_params,
                                w_lin, b_lin)
    ref = jax.block_until_ready(ref)

    assert out.shape == (G, C)
    # Tolerance covers bf16 operand rounding in the kernel matmuls (accumulation
    # is f32); reference runs in pure f32 HIGHEST precision.
    np.testing.assert_allclose(np.asarray(out), np.asarray(ref), rtol=3e-2, atol=3e-3)
    print("KERNEL_OK")
</pallas_src>

<mosaic_0001>
module attributes {stable_mosaic.version = 11 : i64} {
  func.func @gin_kernel(%arg0: memref<3xf32, #tpu.memory_space<smem>>, %arg1: memref<128x128xf32, #tpu.memory_space<vmem>>, %arg2: memref<128x128xbf16, #tpu.memory_space<vmem>>, %arg3: memref<128x128xbf16, #tpu.memory_space<vmem>>, %arg4: memref<128x128xbf16, #tpu.memory_space<vmem>>, %arg5: memref<3x128x128xbf16, #tpu.memory_space<vmem>>, %arg6: memref<3x1x128xf32, #tpu.memory_space<vmem>>, %arg7: memref<3x128x128xbf16, #tpu.memory_space<vmem>>, %arg8: memref<3x1x128xf32, #tpu.memory_space<vmem>>, %arg9: memref<8x128xbf16, #tpu.memory_space<vmem>>, %arg10: memref<8x1xf32, #tpu.memory_space<vmem>>, %arg11: memref<128x128xbf16, #tpu.memory_space<vmem>>, %arg12: memref<1x128xf32, #tpu.memory_space<vmem>>, %arg13: memref<8x128xf32, #tpu.memory_space<vmem>>) attributes {dimension_semantics = [], scalar_prefetch = 0 : i64, scratch_operands = 0 : i64, tpu.core_type = #tpu.core_type<tc>} {
    %c0 = arith.constant 0 : index
    %c0_0 = arith.constant 0 : index
    %0 = vector.load %arg2[%c0, %c0_0] : memref<128x128xbf16, #tpu.memory_space<vmem>>, vector<128x128xbf16>
    %1 = arith.extf %0 : vector<128x128xbf16> to vector<128x128xf32>
    %c0_1 = arith.constant 0 : index
    %c0_2 = arith.constant 0 : index
    %2 = vector.load %arg1[%c0_1, %c0_2] : memref<128x128xf32, #tpu.memory_space<vmem>>, vector<128x128xf32>
    %c0_i32 = arith.constant 0 : i32
    %3 = arith.truncf %2 : vector<128x128xf32> to vector<128x128xbf16>
    %c0_3 = arith.constant 0 : index
    %c0_4 = arith.constant 0 : index
    %4 = vector.load %arg3[%c0_3, %c0_4] : memref<128x128xbf16, #tpu.memory_space<vmem>>, vector<128x128xbf16>
    %cst = arith.constant dense<0.000000e+00> : vector<128x128xf32>
    %5 = tpu.matmul %4, %3, %cst {dimension_numbers = #tpu.dot_dimension_numbers<[1], [0], [0], [1], [0, 0, 1, 1], [], []>} : vector<128x128xbf16>, vector<128x128xbf16>, vector<128x128xf32> -> vector<128x128xf32>
    %6 = arith.addf %5, %1 : vector<128x128xf32>
    %cst_5 = arith.constant 0.000000e+00 : f32
    %7 = vector.broadcast %cst_5 : f32 to vector<128x128xf32>
    %8 = arith.maximumf %6, %7 : vector<128x128xf32>
    %c0_6 = arith.constant 0 : index
    %c0_7 = arith.constant 0 : index
    %9 = vector.load %arg4[%c0_6, %c0_7] : memref<128x128xbf16, #tpu.memory_space<vmem>>, vector<128x128xbf16>
    %10 = arith.truncf %8 : vector<128x128xf32> to vector<128x128xbf16>
    %cst_8 = arith.constant dense<0.000000e+00> : vector<128x128xf32>
    %11 = tpu.matmul %9, %10, %cst_8 {dimension_numbers = #tpu.dot_dimension_numbers<[1], [0], [0], [1], [0, 0, 1, 1], [], []>} : vector<128x128xbf16>, vector<128x128xbf16>, vector<128x128xf32> -> vector<128x128xf32>
    %12 = arith.index_cast %c0_i32 : i32 to index
    %13 = memref.load %arg0[%12] : memref<3xf32, #tpu.memory_space<smem>>
    %cst_9 = arith.constant 1.000000e+00 : f32
    %14 = arith.addf %cst_9, %13 : f32
    %15 = vector.broadcast %14 : f32 to vector<128x128xf32>
    %16 = arith.mulf %2, %15 : vector<128x128xf32>
    %17 = arith.addf %16, %11 : vector<128x128xf32>
    %18 = arith.truncf %17 : vector<128x128xf32> to vector<128x128xbf16>
    %19 = arith.index_cast %c0_i32 : i32 to index
    %c0_10 = arith.constant 0 : index
    %c0_11 = arith.constant 0 : index
    %20 = vector.load %arg5[%19, %c0_10, %c0_11] : memref<3x128x128xbf16, #tpu.memory_space<vmem>>, vector<1x128x128xbf16>
    %21 = vector.shape_cast %20 : vector<1x128x128xbf16> to vector<128x128xbf16>
    %cst_12 = arith.constant dense<0.000000e+00> : vector<128x128xf32>
    %22 = tpu.matmul %18, %21, %cst_12 {dimension_numbers = #tpu.dot_dimension_numbers<[1], [0], [0], [1], [0, 0, 1, 1], [], []>} : vector<128x128xbf16>, vector<128x128xbf16>, vector<128x128xf32> -> vector<128x128xf32>
    %23 = arith.index_cast %c0_i32 : i32 to index
    %c0_13 = arith.constant 0 : index
    %c0_14 = arith.constant 0 : index
    %24 = vector.load %arg6[%23, %c0_13, %c0_14] : memref<3x1x128xf32, #tpu.memory_space<vmem>>, vector<1x1x128xf32>
    %25 = vector.shape_cast %24 : vector<1x1x128xf32> to vector<1x128xf32>
    %26 = vector.broadcast %25 : vector<1x128xf32> to vector<128x128xf32>
    %27 = arith.addf %22, %26 : vector<128x128xf32>
    %cst_15 = arith.constant 0.000000e+00 : f32
    %28 = vector.broadcast %cst_15 : f32 to vector<128x128xf32>
    %29 = arith.maximumf %27, %28 : vector<128x128xf32>
    %30 = arith.truncf %29 : vector<128x128xf32> to vector<128x128xbf16>
    %31 = arith.index_cast %c0_i32 : i32 to index
    %c0_16 = arith.constant 0 : index
    %c0_17 = arith.constant 0 : index
    %32 = vector.load %arg7[%31, %c0_16, %c0_17] : memref<3x128x128xbf16, #tpu.memory_space<vmem>>, vector<1x128x128xbf16>
    %33 = vector.shape_cast %32 : vector<1x128x128xbf16> to vector<128x128xbf16>
    %cst_18 = arith.constant dense<0.000000e+00> : vector<128x128xf32>
    %34 = tpu.matmul %30, %33, %cst_18 {dimension_numbers = #tpu.dot_dimension_numbers<[1], [0], [0], [1], [0, 0, 1, 1], [], []>} : vector<128x128xbf16>, vector<128x128xbf16>, vector<128x128xf32> -> vector<128x128xf32>
    %35 = arith.index_cast %c0_i32 : i32 to index
    %c0_19 = arith.constant 0 : index
    %c0_20 = arith.constant 0 : index
    %36 = vector.load %arg8[%35, %c0_19, %c0_20] : memref<3x1x128xf32, #tpu.memory_space<vmem>>, vector<1x1x128xf32>
    %37 = vector.shape_cast %36 : vector<1x1x128xf32> to vector<1x128xf32>
    %38 = vector.broadcast %37 : vector<1x128xf32> to vector<128x128xf32>
    %39 = arith.addf %34, %38 : vector<128x128xf32>
    %cst_21 = arith.constant 0.000000e+00 : f32
    %40 = vector.broadcast %cst_21 : f32 to vector<128x128xf32>
    %41 = arith.maximumf %39, %40 : vector<128x128xf32>
    %c1_i32 = arith.constant 1 : i32
    %42 = arith.truncf %41 : vector<128x128xf32> to vector<128x128xbf16>
    %c0_22 = arith.constant 0 : index
    %c0_23 = arith.constant 0 : index
    %43 = vector.load %arg3[%c0_22, %c0_23] : memref<128x128xbf16, #tpu.memory_space<vmem>>, vector<128x128xbf16>
    %cst_24 = arith.constant dense<0.000000e+00> : vector<128x128xf32>
    %44 = tpu.matmul %43, %42, %cst_24 {dimension_numbers = #tpu.dot_dimension_numbers<[1], [0], [0], [1], [0, 0, 1, 1], [], []>} : vector<128x128xbf16>, vector<128x128xbf16>, vector<128x128xf32> -> vector<128x128xf32>
    %45 = arith.addf %44, %1 : vector<128x128xf32>
    %cst_25 = arith.constant 0.000000e+00 : f32
    %46 = vector.broadcast %cst_25 : f32 to vector<128x128xf32>
    %47 = arith.maximumf %45, %46 : vector<128x128xf32>
    %c0_26 = arith.constant 0 : index
    %c0_27 = arith.constant 0 : index
    %48 = vector.load %arg4[%c0_26, %c0_27] : memref<128x128xbf16, #tpu.memory_space<vmem>>, vector<128x128xbf16>
    %49 = arith.truncf %47 : vector<128x128xf32> to vector<128x128xbf16>
    %cst_28 = arith.constant dense<0.000000e+00> : vector<128x128xf32>
    %50 = tpu.matmul %48, %49, %cst_28 {dimension_numbers = #tpu.dot_dimension_numbers<[1], [0], [0], [1], [0, 0, 1, 1], [], []>} : vector<128x128xbf16>, vector<128x128xbf16>, vector<128x128xf32> -> vector<128x128xf32>
    %51 = arith.index_cast %c1_i32 : i32 to index
    %52 = memref.load %arg0[%51] : memref<3xf32, #tpu.memory_space<smem>>
    %cst_29 = arith.constant 1.000000e+00 : f32
    %53 = arith.addf %cst_29, %52 : f32
    %54 = vector.broadcast %53 : f32 to vector<128x128xf32>
    %55 = arith.mulf %41, %54 : vector<128x128xf32>
    %56 = arith.addf %55, %50 : vector<128x128xf32>
    %57 = arith.truncf %56 : vector<128x128xf32> to vector<128x128xbf16>
    %58 = arith.index_cast %c1_i32 : i32 to index
    %c0_30 = arith.constant 0 : index
    %c0_31 = arith.constant 0 : index
    %59 = vector.load %arg5[%58, %c0_30, %c0_31] : memref<3x128x128xbf16, #tpu.memory_space<vmem>>, vector<1x128x128xbf16>
    %60 = vector.shape_cast %59 : vector<1x128x128xbf16> to vector<128x128xbf16>
    %cst_32 = arith.constant dense<0.000000e+00> : vector<128x128xf32>
    %61 = tpu.matmul %57, %60, %cst_32 {dimension_numbers = #tpu.dot_dimension_numbers<[1], [0], [0], [1], [0, 0, 1, 1], [], []>} : vector<128x128xbf16>, vector<128x128xbf16>, vector<128x128xf32> -> vector<128x128xf32>
    %62 = arith.index_cast %c1_i32 : i32 to index
    %c0_33 = arith.constant 0 : index
    %c0_34 = arith.constant 0 : index
    %63 = vector.load %arg6[%62, %c0_33, %c0_34] : memref<3x1x128xf32, #tpu.memory_space<vmem>>, vector<1x1x128xf32>
    %64 = vector.shape_cast %63 : vector<1x1x128xf32> to vector<1x128xf32>
    %65 = vector.broadcast %64 : vector<1x128xf32> to vector<128x128xf32>
    %66 = arith.addf %61, %65 : vector<128x128xf32>
    %cst_35 = arith.constant 0.000000e+00 : f32
    %67 = vector.broadcast %cst_35 : f32 to vector<128x128xf32>
    %68 = arith.maximumf %66, %67 : vector<128x128xf32>
    %69 = arith.truncf %68 : vector<128x128xf32> to vector<128x128xbf16>
    %70 = arith.index_cast %c1_i32 : i32 to index
    %c0_36 = arith.constant 0 : index
    %c0_37 = arith.constant 0 : index
    %71 = vector.load %arg7[%70, %c0_36, %c0_37] : memref<3x128x128xbf16, #tpu.memory_space<vmem>>, vector<1x128x128xbf16>
    %72 = vector.shape_cast %71 : vector<1x128x128xbf16> to vector<128x128xbf16>
    %cst_38 = arith.constant dense<0.000000e+00> : vector<128x128xf32>
    %73 = tpu.matmul %69, %72, %cst_38 {dimension_numbers = #tpu.dot_dimension_numbers<[1], [0], [0], [1], [0, 0, 1, 1], [], []>} : vector<128x128xbf16>, vector<128x128xbf16>, vector<128x128xf32> -> vector<128x128xf32>
    %74 = arith.index_cast %c1_i32 : i32 to index
    %c0_39 = arith.constant 0 : index
    %c0_40 = arith.constant 0 : index
    %75 = vector.load %arg8[%74, %c0_39, %c0_40] : memref<3x1x128xf32, #tpu.memory_space<vmem>>, vector<1x1x128xf32>
    %76 = vector.shape_cast %75 : vector<1x1x128xf32> to vector<1x128xf32>
    %77 = vector.broadcast %76 : vector<1x128xf32> to vector<128x128xf32>
    %78 = arith.addf %73, %77 : vector<128x128xf32>
    %cst_41 = arith.constant 0.000000e+00 : f32
    %79 = vector.broadcast %cst_41 : f32 to vector<128x128xf32>
    %80 = arith.maximumf %78, %79 : vector<128x128xf32>
    %c2_i32 = arith.constant 2 : i32
    %81 = arith.truncf %80 : vector<128x128xf32> to vector<128x128xbf16>
    %c0_42 = arith.constant 0 : index
    %c0_43 = arith.constant 0 : index
    %82 = vector.load %arg3[%c0_42, %c0_43] : memref<128x128xbf16, #tpu.memory_space<vmem>>, vector<128x128xbf16>
    %cst_44 = arith.constant dense<0.000000e+00> : vector<128x128xf32>
    %83 = tpu.matmul %82, %81, %cst_44 {dimension_numbers = #tpu.dot_dimension_numbers<[1], [0], [0], [1], [0, 0, 1, 1], [], []>} : vector<128x128xbf16>, vector<128x128xbf16>, vector<128x128xf32> -> vector<128x128xf32>
    %84 = arith.addf %83, %1 : vector<128x128xf32>
    %cst_45 = arith.constant 0.000000e+00 : f32
    %85 = vector.broadcast %cst_45 : f32 to vector<128x128xf32>
    %86 = arith.maximumf %84, %85 : vector<128x128xf32>
    %c0_46 = arith.constant 0 : index
    %c0_47 = arith.constant 0 : index
    %87 = vector.load %arg4[%c0_46, %c0_47] : memref<128x128xbf16, #tpu.memory_space<vmem>>, vector<128x128xbf16>
    %88 = arith.truncf %86 : vector<128x128xf32> to vector<128x128xbf16>
    %cst_48 = arith.constant dense<0.000000e+00> : vector<128x128xf32>
    %89 = tpu.matmul %87, %88, %cst_48 {dimension_numbers = #tpu.dot_dimension_numbers<[1], [0], [0], [1], [0, 0, 1, 1], [], []>} : vector<128x128xbf16>, vector<128x128xbf16>, vector<128x128xf32> -> vector<128x128xf32>
    %90 = arith.index_cast %c2_i32 : i32 to index
    %91 = memref.load %arg0[%90] : memref<3xf32, #tpu.memory_space<smem>>
    %cst_49 = arith.constant 1.000000e+00 : f32
    %92 = arith.addf %cst_49, %91 : f32
    %93 = vector.broadcast %92 : f32 to vector<128x128xf32>
    %94 = arith.mulf %80, %93 : vector<128x128xf32>
    %95 = arith.addf %94, %89 : vector<128x128xf32>
    %96 = arith.truncf %95 : vector<128x128xf32> to vector<128x128xbf16>
    %97 = arith.index_cast %c2_i32 : i32 to index
    %c0_50 = arith.constant 0 : index
    %c0_51 = arith.constant 0 : index
    %98 = vector.load %arg5[%97, %c0_50, %c0_51] : memref<3x128x128xbf16, #tpu.memory_space<vmem>>, vector<1x128x128xbf16>
    %99 = vector.shape_cast %98 : vector<1x128x128xbf16> to vector<128x128xbf16>
    %cst_52 = arith.constant dense<0.000000e+00> : vector<128x128xf32>
    %100 = tpu.matmul %96, %99, %cst_52 {dimension_numbers = #tpu.dot_dimension_numbers<[1], [0], [0], [1], [0, 0, 1, 1], [], []>} : vector<128x128xbf16>, vector<128x128xbf16>, vector<128x128xf32> -> vector<128x128xf32>
    %101 = arith.index_cast %c2_i32 : i32 to index
    %c0_53 = arith.constant 0 : index
    %c0_54 = arith.constant 0 : index
    %102 = vector.load %arg6[%101, %c0_53, %c0_54] : memref<3x1x128xf32, #tpu.memory_space<vmem>>, vector<1x1x128xf32>
    %103 = vector.shape_cast %102 : vector<1x1x128xf32> to vector<1x128xf32>
    %104 = vector.broadcast %103 : vector<1x128xf32> to vector<128x128xf32>
    %105 = arith.addf %100, %104 : vector<128x128xf32>
    %cst_55 = arith.constant 0.000000e+00 : f32
    %106 = vector.broadcast %cst_55 : f32 to vector<128x128xf32>
    %107 = arith.maximumf %105, %106 : vector<128x128xf32>
    %108 = arith.truncf %107 : vector<128x128xf32> to vector<128x128xbf16>
    %109 = arith.index_cast %c2_i32 : i32 to index
    %c0_56 = arith.constant 0 : index
    %c0_57 = arith.constant 0 : index
    %110 = vector.load %arg7[%109, %c0_56, %c0_57] : memref<3x128x128xbf16, #tpu.memory_space<vmem>>, vector<1x128x128xbf16>
    %111 = vector.shape_cast %110 : vector<1x128x128xbf16> to vector<128x128xbf16>
    %cst_58 = arith.constant dense<0.000000e+00> : vector<128x128xf32>
    %112 = tpu.matmul %108, %111, %cst_58 {dimension_numbers = #tpu.dot_dimension_numbers<[1], [0], [0], [1], [0, 0, 1, 1], [], []>} : vector<128x128xbf16>, vector<128x128xbf16>, vector<128x128xf32> -> vector<128x128xf32>
    %113 = arith.index_cast %c2_i32 : i32 to index
    %c0_59 = arith.constant 0 : index
    %c0_60 = arith.constant 0 : index
    %114 = vector.load %arg8[%113, %c0_59, %c0_60] : memref<3x1x128xf32, #tpu.memory_space<vmem>>, vector<1x1x128xf32>
    %115 = vector.shape_cast %114 : vector<1x1x128xf32> to vector<1x128xf32>
    %116 = vector.broadcast %115 : vector<1x128xf32> to vector<128x128xf32>
    %117 = arith.addf %112, %116 : vector<128x128xf32>
    %cst_61 = arith.constant 0.000000e+00 : f32
    %118 = vector.broadcast %cst_61 : f32 to vector<128x128xf32>
    %119 = arith.maximumf %117, %118 : vector<128x128xf32>
    %c3_i32 = arith.constant 3 : i32
    %c0_62 = arith.constant 0 : index
    %c0_63 = arith.constant 0 : index
    %120 = vector.load %arg9[%c0_62, %c0_63] : memref<8x128xbf16, #tpu.memory_space<vmem>>, vector<8x128xbf16>
    %121 = arith.truncf %119 : vector<128x128xf32> to vector<128x128xbf16>
    %cst_64 = arith.constant dense<0.000000e+00> : vector<8x128xf32>
    %122 = tpu.matmul %120, %121, %cst_64 {dimension_numbers = #tpu.dot_dimension_numbers<[1], [0], [0], [1], [0, 0, 1, 1], [], []>} : vector<8x128xbf16>, vector<128x128xbf16>, vector<8x128xf32> -> vector<8x128xf32>
    %c0_65 = arith.constant 0 : index
    %c0_66 = arith.constant 0 : index
    %123 = vector.load %arg10[%c0_65, %c0_66] : memref<8x1xf32, #tpu.memory_space<vmem>>, vector<8x1xf32>
    %124 = vector.broadcast %123 : vector<8x1xf32> to vector<8x128xf32>
    %125 = arith.mulf %122, %124 : vector<8x128xf32>
    %126 = arith.truncf %125 : vector<8x128xf32> to vector<8x128xbf16>
    %c0_67 = arith.constant 0 : index
    %c0_68 = arith.constant 0 : index
    %127 = vector.load %arg11[%c0_67, %c0_68] : memref<128x128xbf16, #tpu.memory_space<vmem>>, vector<128x128xbf16>
    %cst_69 = arith.constant dense<0.000000e+00> : vector<8x128xf32>
    %128 = tpu.matmul %126, %127, %cst_69 {dimension_numbers = #tpu.dot_dimension_numbers<[1], [0], [0], [1], [0, 0, 1, 1], [], []>} : vector<8x128xbf16>, vector<128x128xbf16>, vector<8x128xf32> -> vector<8x128xf32>
    %c0_70 = arith.constant 0 : index
    %c0_71 = arith.constant 0 : index
    %129 = vector.load %arg12[%c0_70, %c0_71] : memref<1x128xf32, #tpu.memory_space<vmem>>, vector<1x128xf32>
    %130 = vector.broadcast %129 : vector<1x128xf32> to vector<8x128xf32>
    %131 = arith.addf %128, %130 : vector<8x128xf32>
    %c0_72 = arith.constant 0 : index
    %c0_73 = arith.constant 0 : index
    %132 = vector.load %arg13[%c0_72, %c0_73] : memref<8x128xf32, #tpu.memory_space<vmem>>, vector<8x128xf32>
    tpu.vector_store %arg13[%c0_72, %c0_73], %131 {strides = array<i32>} : memref<8x128xf32, #tpu.memory_space<vmem>>, vector<8x128xf32>,
    return
  }
}

</mosaic_0001>

<bundles_post_ra>
// kernel: tpu_custom_call.1
= control target key start
LH: loop header
LB: loop body
LE: loop exit
PB: predicated region body
PF: predicated region fallthrough
CT: control target
= control target key end

     0   :  { %18 = vsyncpa [#allocation5], 0  ;;  %s4125_s0 = inlined_call_operand.hbm [shape: f32[3], index: 0, kind: input, shape index: {}]   ;;  %s4126_s1 = inlined_call_operand.hbm [shape: f32[128,128], index: 1, kind: input, shape index: {}]   ;;  %s4127_s2 = inlined_call_operand.hbm [shape: bf16[128,128], index: 2, kind: input, shape index: {}]   ;;  %s4128_s3 = inlined_call_operand.hbm [shape: bf16[128,128], index: 3, kind: input, shape index: {}]   ;;  %s4129_s4 = inlined_call_operand.hbm [shape: bf16[128,128], index: 4, kind: input, shape index: {}]   ;;  %s4130_s5 = inlined_call_operand.hbm [shape: bf16[3,128,128], index: 5, kind: input, shape index: {}]   ;;  %s4131_s6 = inlined_call_operand.vmem [shape: f32[3,1,128], index: 6, kind: input, shape index: {}]   ;;  %s4132_s7 = inlined_call_operand.hbm [shape: bf16[3,128,128], index: 7, kind: input, shape index: {}]   ;;  %s4133_s8 = inlined_call_operand.vmem [shape: f32[3,1,128], index: 8, kind: input, shape index: {}]   ;;  %s4134_s9 = inlined_call_operand.vmem [shape: bf16[8,128], index: 9, kind: input, shape index: {}]   ;;  %s4135_s10 = inlined_call_operand.vmem [shape: f32[8,1], index: 10, kind: input, shape index: {}]   ;;  %s4136_s11 = inlined_call_operand.hbm [shape: bf16[128,128], index: 11, kind: input, shape index: {}]   ;;  %s4137_s12 = inlined_call_operand.vmem [shape: f32[1,128], index: 12, kind: input, shape index: {}]   ;;  %s4138_s13 = inlined_call_operand.hbm [shape: f32[8,128], index: 13, kind: output, shape index: {}]  }
   0x1   :  { %19 = vsyncpa [#allocation3], 0 }
   0x2   :  { %20 = vsyncpa [#allocation8], 0 }
   0x3   :  { %21 = vsyncpa [#allocation11], 0 }
   0x4   :  { %22 = vsyncpa [#allocation14], 0 }
   0x5   :  { %23 = vsyncpa [#allocation4], 0  ;;  %s3502_s25 = smov [#allocation7]  }
   0x6   :  { %s49_s26 = sshll.u32 %s3502_s25, 4  ;;  %s50_s26 = int_to_ptr.vmem [resolvable:$true] %s49_s26 }
   0x7   :  { %s3330_s27 = scalar_lea.vmem %s50_s26, 1024  ;;  %p3335_p1 = scmp.lt.s32.totalorder %s50_s26, %s50_s26 }
   0x8   :  { %p3331_p0 = scmp.ne.s32.totalorder %s50_s26, %s3330_s27  ;;  %p3336_p2 = scmp.lt.s32.totalorder %s3330_s27, %s3330_s27 }
   0xa   :  { %p3337_p3 = por %p3336_p2, %p3335_p1 }
   0xc   :  { %p3338_p4 = pnand %p3337_p3, %p3331_p0 }
   0xe   :  { %3341 = shalt.err (!%p3338_p4)
}
   0xf   :  { %s3503_s28 = smov 64   ;;  %s3504_s29 = smov 4  }
  0x10   :  { %55 = dma.hbm_to_vmem [thread:$0]  %s4127_s2, 1024, %s50_s26, [#allocation8], %s3503_s28, %s3503_s28, %s3504_s29  }
  0x11   :  { %s3505_s15 = smov [#allocation10]   ;;  %s3506_s17 = smov [#allocation13]  }
  0x12   :  { %s73_s16 = sshll.u32 %s3505_s15, 4  ;;  %s99_s18 = sshll.u32 %s3506_s17, 4  ;;  %s74_s16 = int_to_ptr.vmem [resolvable:$true] %s73_s16  ;;  %s100_s18 = int_to_ptr.vmem [resolvable:$true] %s99_s18 }
  0x13   :  { %s3350_s19 = scalar_lea.vmem %s74_s16, 1024  ;;  %p3355_p6 = scmp.lt.s32.totalorder %s74_s16, %s74_s16 }
  0x14   :  { %p3351_p5 = scmp.ne.s32.totalorder %s74_s16, %s3350_s19  ;;  %p3356_p7 = scmp.lt.s32.totalorder %s3350_s19, %s3350_s19 }
  0x16   :  { %p3357_p8 = por %p3356_p7, %p3355_p6 }
  0x18   :  { %p3358_p9 = pnand %p3357_p8, %p3351_p5 }
  0x1a   :  { %3361 = shalt.err (!%p3358_p9)
}
  0x1b   :  { %79 = dma.hbm_to_vmem [thread:$0]  %s4129_s4, 1024, %s74_s16, [#allocation11], %s3503_s28, %s3503_s28, %s3504_s29  }
  0x1c   :  { %s3370_s2 = scalar_lea.vmem %s100_s18, 3072  ;;  %p3375_p11 = scmp.lt.s32.totalorder %s100_s18, %s100_s18 }
  0x1d   :  { %p3371_p10 = scmp.ne.s32.totalorder %s100_s18, %s3370_s2  ;;  %p3376_p12 = scmp.lt.s32.totalorder %s3370_s2, %s3370_s2 }
  0x1f   :  { %p3377_p13 = por %p3376_p12, %p3375_p11 }
  0x21   :  { %p3378_p0 = pnand %p3377_p13, %p3371_p10 }
  0x23   :  { %3381 = shalt.err (!%p3378_p0)
}
  0x24   :  { %105 = dma.hbm_to_vmem [thread:$0]  %s4132_s7, 3072, %s100_s18, [#allocation14], %s3503_s28, %s3503_s28, %s3504_s29  }
  0x25   :  { %s3507_s24 = smov [#allocation2]   ;;  %s3508_s4 = smov [#allocation6]  }
  0x26   :  { %31 = dma.hbm_to_smem %s4125_s0, 16, %s3507_s24, [#allocation5]  }
  0x27   :  { %s37_s27 = sshll.u32 %s3508_s4, 4  ;;  %s38_s27 = int_to_ptr.vmem [resolvable:$true] %s37_s27 }
  0x28   :  { %s3398_s30 = scalar_lea.vmem %s38_s27, 2048  ;;  %p3403_p2 = scmp.lt.s32.totalorder %s38_s27, %s38_s27 }
  0x29   :  { %p3399_p1 = scmp.ne.s32.totalorder %s38_s27, %s3398_s30  ;;  %p3404_p3 = scmp.lt.s32.totalorder %s3398_s30, %s3398_s30 }
  0x2b   :  { %p3405_p4 = por %p3404_p3, %p3403_p2 }
  0x2d   :  { %p3406_p5 = pnand %p3405_p4, %p3399_p1 }
  0x2f   :  { %3409 = shalt.err (!%p3406_p5)
}
  0x30   :  { %s3509_s14 = smov 128   ;;  %s3510_s15 = smov 8  }
  0x31   :  { %43 = dma.hbm_to_vmem [thread:$0]  %s4126_s1, 2048, %s38_s27, [#allocation3], %s3509_s14, %s3509_s14, %s3510_s15  }
  0x32   :  { %s3511_s7 = smov [#allocation9]   ;;  %s3512_s0 = smov [#allocation12]  }
  0x33   :  { %s61_s18 = sshll.u32 %s3511_s7, 4  ;;  %s85_s19 = sshll.u32 %s3512_s0, 4  ;;  %s62_s18 = int_to_ptr.vmem [resolvable:$true] %s61_s18  ;;  %s86_s19 = int_to_ptr.vmem [resolvable:$true] %s85_s19 }
  0x34   :  { %s3418_s20 = scalar_lea.vmem %s62_s18, 1024  ;;  %p3423_p7 = scmp.lt.s32.totalorder %s62_s18, %s62_s18 }
  0x35   :  { %p3419_p6 = scmp.ne.s32.totalorder %s62_s18, %s3418_s20  ;;  %p3424_p8 = scmp.lt.s32.totalorder %s3418_s20, %s3418_s20 }
  0x37   :  { %p3425_p9 = por %p3424_p8, %p3423_p7 }
  0x39   :  { %p3426_p10 = pnand %p3425_p9, %p3419_p6 }
  0x3b   :  { %3429 = shalt.err (!%p3426_p10)
}
  0x3c   :  { %67 = dma.hbm_to_vmem [thread:$0]  %s4128_s3, 1024, %s62_s18, [#allocation8], %s3503_s28, %s3503_s28, %s3504_s29  }
  0x3d   :  { %s3438_s1 = scalar_lea.vmem %s86_s19, 3072  ;;  %p3443_p12 = scmp.lt.s32.totalorder %s86_s19, %s86_s19 }
  0x3e   :  { %p3439_p11 = scmp.ne.s32.totalorder %s86_s19, %s3438_s1  ;;  %p3444_p13 = scmp.lt.s32.totalorder %s3438_s1, %s3438_s1 }
  0x40   :  { %p3445_p0 = por %p3444_p13, %p3443_p12 }
  0x42   :  { %p3446_p1 = pnand %p3445_p0, %p3439_p11 }
  0x44   :  { %3449 = shalt.err (!%p3446_p1)
}
  0x45   :  { %91 = dma.hbm_to_vmem [thread:$0]  %s4130_s5, 3072, %s86_s19, [#allocation11], %s3503_s28, %s3503_s28, %s3504_s29  }
  0x46   :  { %s3513_s24 = smov [#allocation15]  }
  0x47   :  { %s117_s25 = sshll.u32 %s3513_s24, 4  ;;  %s118_s25 = int_to_ptr.vmem [resolvable:$true] %s117_s25 }
  0x48   :  { %s3458_s26 = scalar_lea.vmem %s118_s25, 1024  ;;  %p3463_p3 = scmp.lt.s32.totalorder %s118_s25, %s118_s25 }
  0x49   :  { %p3459_p2 = scmp.ne.s32.totalorder %s118_s25, %s3458_s26  ;;  %p3464_p4 = scmp.lt.s32.totalorder %s3458_s26, %s3458_s26 }
  0x4b   :  { %p3465_p5 = por %p3464_p4, %p3463_p3 }
  0x4d   :  { %p3466_p6 = pnand %p3465_p5, %p3459_p2 }
  0x4f   :  { %3469 = shalt.err (!%p3466_p6)
}
  0x50   :  { %123 = dma.hbm_to_vmem [thread:$0]  %s4136_s11, 1024, %s118_s25, [#allocation14], %s3503_s28, %s3503_s28, %s3504_s29  }
  0x51   :  { %3490 = dma.done.wait [#allocation5], 16  }
  0x52   :  { %3491 = vsyncadd [#allocation5], 4294967280 }
  0x53   :  { %3492 = dma.done.wait [#allocation3], 2048  }
  0x54   :  { %3493 = vsyncadd [#allocation3], 4294965248 }
  0x55   :  { %3494 = dma.done.wait [#allocation8], 2048  }
  0x56   :  { %3495 = vsyncadd [#allocation8], 4294965248 }
  0x57   :  { %3496 = dma.done.wait [#allocation11], 4096  }
  0x58   :  { %3497 = vsyncadd [#allocation11], 4294963200 }
  0x59   :  { %3498 = dma.done.wait [#allocation14], 4096  }
  0x5a   :  { %3499 = vsyncadd [#allocation14], 4294963200 }
  0x5b   :  { %150 = sfence }
  0x5c   :  { %v3630_v0 = vld [vmem:[#allocation6 + $0x70] sm:$0xff]  ;;  %v3632_v1 = vld [vmem:[#allocation6 + $0x78] sm:$0xff]  ;;  %v3634_v2 = vld [vmem:[#allocation6 + $0x60] sm:$0xff]  ;;  %s554_s5 = sld [smem:[#allocation2]]  ;;  %vm3515_vm0 = vmmov 0   ;;  %s3517_s25 = smov [#allocation16]  }
  0x5d   :  { %v207_v3 = vpack.c.bf16 %v3632_v1, %v3630_v0  ;;  %v3638_v4 = vld [vmem:[#allocation6 + $0x68] sm:$0xff]  ;;  %v3642_v6 = vld [vmem:[#allocation6 + $0x50] sm:$0xff]  ;;  %v3644_v7 = vld [vmem:[#allocation6 + $0x58] sm:$0xff]  ;;  %s2493_s14 = sld [smem:[#allocation2 + $0x1]]  ;;  %s2446_s26 = sshll.u32 %s3517_s25, 4  ;;  %s2447_s26 = int_to_ptr.vmem [resolvable:$true] %s2446_s26 }
  0x5e   :  { %v206_v5 = vpack.c.bf16 %v3638_v4, %v3634_v2  ;;  %v3646_v8 = vld [vmem:[#allocation6 + $0x40] sm:$0xff]  ;;  %v205_v9 = vpack.c.bf16 %v3644_v7, %v3642_v6  ;;  %v3650_v10 = vld [vmem:[#allocation6 + $0x48] sm:$0xff]  ;;  %v3657_v13 = vld [vmem:[#allocation6 + $0x30] sm:$0xff]  ;;  %s2514_s0 = sld [smem:[#allocation2 + $0x2]]  ;;  %p3475_p8 = scmp.lt.s32.totalorder %s2447_s26, %s2447_s26 }
  0x5f   :  { %2793 = vmatprep.subr.bf16.mxu0 %v207_v3  ;;  %v3652_v11 = vld [vmem:[#allocation9] sm:$0xff]   ;;  %v204_v12 = vpack.c.bf16 %v3650_v10, %v3646_v8  ;;  %v3659_v14 = vld [vmem:[#allocation6 + $0x38] sm:$0xff]  ;;  %v3665_v17 = vld [vmem:[#allocation6 + $0x28] sm:$0xff] }
  0x60   :  { %2794 = vmatpush3.bf16.msra.mxu0 %v207_v3  ;;  %2809 = vmatprep.mubr.bf16.mxu0 %v3652_v11  ;;  %v203_v15 = vpack.c.bf16 %v3659_v14, %v3657_v13  ;;  %v3663_v16 = vld [vmem:[#allocation6 + $0x20] sm:$0xff]  ;;  %v3667_v18 = vld [vmem:[#allocation6 + $0x10] sm:$0xff]  ;;  %v3669_v19 = vld [vmem:[#allocation6 + $0x18] sm:$0xff] }
  0x61   :  { %2795 = vmatprep.subr.bf16.mxu0 %v206_v5  ;;  %v202_v20 = vpack.c.bf16 %v3665_v17, %v3663_v16  ;;  %v3673_v21 = vld [vmem:[#allocation6] sm:$0xff]  ;;  %v3675_v22 = vld [vmem:[#allocation6 + $0x8] sm:$0xff]  ;;  %v201_v23 = vpack.c.bf16 %v3669_v19, %v3667_v18  ;;  %v3683_v26 = vld [vmem:[#allocation9 + $0x10] sm:$0xff]  }
  0x62   :  { %v200_v24 = vpack.c.bf16 %v3675_v22, %v3673_v21  ;;  %v3681_v25 = vld [vmem:[#allocation9 + $0x8] sm:$0xff]   ;;  %v3687_v27 = vld [vmem:[#allocation9 + $0x18] sm:$0xff]   ;;  %v3689_v28 = vld [vmem:[#allocation9 + $0x20] sm:$0xff]   ;;  %s555_s11 = sadd.f32 1.0, %s554_s5 }
  0x63   :  { %v3693_v29 = vld [vmem:[#allocation9 + $0x28] sm:$0xff]   ;;  %v3695_v30 = vld [vmem:[#allocation9 + $0x30] sm:$0xff]   ;;  %v3699_v31 = vld [vmem:[#allocation9 + $0x38] sm:$0xff]   ;;  %s1200_s15 = sadd.f32 1.0, %s2493_s14 }
  0x64   :  { %2796 = vmatpush3.bf16.msra.mxu0 %v206_v5  ;;  %v3702_v32 = vld [vmem:[#allocation10] sm:$0xff]   ;;  %v3250_v33 = vld [vmem:[#allocation12 + $0x38] sm:$0xff]   ;;  %v3251_v34 = vld [vmem:[#allocation12 + $0x30] sm:$0xff]   ;;  %s1849_s19 = sadd.f32 1.0, %s2514_s0 }
  0x65   :  { %2797 = vmatprep.subr.bf16.mxu0 %v205_v9  ;;  %2841 = vmatprep.mubr.bf16.mxu1 %v3702_v32  ;;  %v3252_v35 = vld [vmem:[#allocation12 + $0x28] sm:$0xff]   ;;  %v3253_v36 = vld [vmem:[#allocation12 + $0x20] sm:$0xff]   ;;  %v3254_v37 = vld [vmem:[#allocation12 + $0x18] sm:$0xff]  }
  0x66   :  { %v2582_v49 = vld [vmem:[#allocation7 + $0x38] sm:$0xff]   ;;  %v2581_v51 = vld [vmem:[#allocation7 + $0x30] sm:$0xff]   ;;  %v2580_v56 = vld [vmem:[#allocation7 + $0x28] sm:$0xff]  }
  0x67   :  { %v3715_v52 = vunpack.c.l.bf16 %v2582_v49  ;;  %v3717_v54 = vunpack.c.l.bf16 %v2581_v51  ;;  %v3719_v55 = vunpack.c.h.bf16 %v2582_v49  ;;  %v3721_v58 = vunpack.c.h.bf16 %v2580_v56  ;;  %v2579_v63 = vld [vmem:[#allocation7 + $0x20] sm:$0xff]   ;;  %v2578_v49 = vld [vmem:[#allocation7 + $0x18] sm:$0xff]  }
  0x68   :  { %2798 = vmatpush3.bf16.msra.mxu0 %v205_v9  ;;  %v3724_v60 = vunpack.c.h.bf16 %v2581_v51  ;;  %v3726_v62 = vunpack.c.l.bf16 %v2580_v56  ;;  %v3730_v9 = vunpack.c.h.bf16 %v2579_v63  ;;  %v3737_v51 = vunpack.c.h.bf16 %v2578_v49 }
  0x69   :  { %2799 = vmatprep.subr.bf16.mxu0 %v204_v12  ;;  %4171 = vst [vmem:[#allocation23_spill] sm:$0xff] %v3715_v52 }
  0x6c   :  { %2800 = vmatpush3.bf16.msra.mxu0 %v204_v12 }
  0x6d   :  { %2801 = vmatprep.subr.bf16.mxu0 %v203_v15 }
  0x70   :  { %2802 = vmatpush3.bf16.msra.mxu0 %v203_v15 }
  0x71   :  { %2803 = vmatprep.subr.bf16.mxu0 %v202_v20 }
  0x74   :  { %2804 = vmatpush3.bf16.msra.mxu0 %v202_v20 }
  0x75   :  { %2805 = vmatprep.subr.bf16.mxu0 %v201_v23 }
  0x78   :  { %2806 = vmatpush3.bf16.msra.mxu0 %v201_v23 }
  0x79   :  { %2807 = vmatprep.subr.bf16.mxu0 %v200_v24 }
  0x7c   :  { %2808 = vmatpush3.bf16.msra.mxu0 %v200_v24 }
  0x7d   :  { %2857 = vmatprep.subr.bf16.mxu0 %v3250_v33 }
  0x7f   :  { %2810 = vmatmul.mubr.bf16.vlgmr.msra.gmra.mxu0 %v3681_v25 }
  0x80   :  { %2813 = vmatprep.mubr.bf16.mxu0 %v3683_v26  ;;  %2858 = vmatpush3.bf16.msra.mxu0 %v3250_v33  ;;  %v3734_v33 = vunpack.c.l.bf16 %v2579_v63  ;;  %v2577_v63 = vld [vmem:[#allocation7 + $0x10] sm:$0xff]  }
  0x81   :  { %2859 = vmatprep.subr.bf16.mxu0 %v3251_v34 }
  0x84   :  { %2860 = vmatpush3.bf16.msra.mxu0 %v3251_v34 }
  0x85   :  { %2861 = vmatprep.subr.bf16.mxu0 %v3252_v35 }
  0x87   :  { %2814 = vmatmul.mubr.bf16.gmra.mxu0 %v3687_v27 }
  0x88   :  { %2817 = vmatprep.mubr.bf16.mxu0 %v3689_v28  ;;  %2862 = vmatpush3.bf16.msra.mxu0 %v3252_v35 }
  0x89   :  { %2863 = vmatprep.subr.bf16.mxu0 %v3253_v36 }
  0x8c   :  { %2864 = vmatpush3.bf16.msra.mxu0 %v3253_v36 }
  0x8d   :  { %2865 = vmatprep.subr.bf16.mxu0 %v3254_v37 }
  0x8f   :  { %2818 = vmatmul.mubr.bf16.gmra.mxu0 %v3693_v29 }
  0x90   :  { %2821 = vmatprep.mubr.bf16.mxu0 %v3695_v30  ;;  %2866 = vmatpush3.bf16.msra.mxu0 %v3254_v37 }
  0x97   :  { %2822 = vmatmul.mubr.bf16.gmra.mxu0 %v3699_v31 }
 0x13f   :  { %v3705_v38 = vpop.f32.mrf.mxu0 }
 0x141   :  { %v3707_v39 = vpop.f32.mrf.mxu0 }
 0x143   :  { %v3709_v40 = vpop.f32.mrf.mxu0 }
 0x145   :  { %v3711_v41 = vpop.f32.mrf.mxu0 }
 0x147   :  { %v2815_v42 = vpop.f32.mrf.mxu0 }
 0x149   :  { %v3713_v43 = vpop.f32.mrf.mxu0 }
 0x14b   :  { %v2816_v44 = vpop.f32.mrf.mxu0 }
 0x14d   :  { %v325_v45 = vpop.f32.mrf.mxu0 }
 0x14f   :  { %v2819_v46 = vpop.f32.mrf.mxu0 }
 0x150   :  { %v347_v34 = vadd.f32 %v2819_v46, %v3726_v62  ;;  %v334_v46 = vadd.f32 %v2816_v44, %v3737_v51 }
 0x151   :  { %v338_v47 = vpop.f32.mrf.mxu0 }
 0x153   :  { %v2820_v48 = vpop.f32.mrf.mxu0 }
 0x154   :  { %v350_v15 = vadd.f32 %v2820_v48, %v3721_v58  ;;  %v3740_v48 = vunpack.c.l.bf16 %v2578_v49 }
 0x155   :  { %v341_v50 = vpop.f32.mrf.mxu0 }
 0x156   :  { %v342_v56 = vadd.f32 %v3730_v9, %v341_v50  ;;  %v3747_v50 = vunpack.c.l.bf16 %v2577_v63 }
 0x157   :  { %v2823_v53 = vpop.f32.mrf.mxu0 }
 0x158   :  { %v363_v59 = vadd.f32 %v2823_v53, %v3715_v52  ;;  %v380_v53 = vmax.f32 %v350_v15, 0.0  ;;  %v331_v15 = vadd.f32 %v2815_v42, %v3740_v48  ;;  %v2545_v42 = vld [vmem:[#allocation7] sm:$0xff]  }
 0x159   :  { %v354_v57 = vpop.f32.mrf.mxu0 }
 0x15a   :  { %v355_v3 = vadd.f32 %v3717_v54, %v354_v57  ;;  %v383_v20 = vmax.f32 %v363_v59, 0.0  ;;  %v379_v59 = vmax.f32 %v347_v34, 0.0  ;;  %v376_v34 = vmax.f32 %v334_v46, 0.0 }
 0x15b   :  { %v2824_v61 = vpop.f32.mrf.mxu0 }
 0x15c   :  { %v366_v5 = vadd.f32 %v2824_v61, %v3719_v55  ;;  %v381_v35 = vmax.f32 %v355_v3, 0.0  ;;  %v339_v61 = vadd.f32 %v3734_v33, %v338_v47  ;;  %v3744_v3 = vunpack.c.h.bf16 %v2577_v63 }
 0x15d   :  { %v357_v12 = vpop.f32.mrf.mxu0 }
 0x15e   :  { %v384_v23 = vmax.f32 %v366_v5, 0.0  ;;  %v358_v24 = vadd.f32 %v3724_v60, %v357_v12  ;;  %v406_v5 = vpack.c.bf16 %v380_v53, %v379_v59  ;;  %v378_v12 = vmax.f32 %v342_v56, 0.0 }
 0x15f   :  { %v326_v47 = vadd.f32 %v3744_v3, %v325_v45  ;;  %v3758_v53 = vunpack.c.h.bf16 %v2545_v42  ;;  %v3762_v59 = vunpack.c.l.bf16 %v2545_v42  ;;  %v3256_v42 = vld [vmem:[#allocation12 + $0x8] sm:$0xff]  }
 0x160   :  { %v382_v36 = vmax.f32 %v358_v24, 0.0  ;;  %v408_v37 = vpack.c.bf16 %v384_v23, %v383_v20  ;;  %v377_v20 = vmax.f32 %v339_v61, 0.0  ;;  %v2576_v23 = vld [vmem:[#allocation7 + $0x8] sm:$0xff]  }
 0x161   :  { %v3749_v24 = vunpack.c.h.bf16 %v2576_v23  ;;  %v3752_v44 = vunpack.c.l.bf16 %v2576_v23  ;;  %v3768_v23 = vld [vmem:[#allocation10 + $0x8] sm:$0xff]  }
 0x162   :  { %v407_v57 = vpack.c.bf16 %v382_v36, %v381_v35  ;;  %2825 = vmatprep.subr.bf16.mxu1 %v408_v37  ;;  %v405_v35 = vpack.c.bf16 %v378_v12, %v377_v20  ;;  %v375_v36 = vmax.f32 %v331_v15, 0.0 }
 0x163   :  { %2826 = vmatpush3.bf16.msra.mxu1 %v408_v37  ;;  %v323_v37 = vadd.f32 %v3747_v50, %v3713_v43  ;;  %v318_v49 = vadd.f32 %v3709_v40, %v3749_v24  ;;  %v315_v45 = vadd.f32 %v3705_v38, %v3752_v44  ;;  %v310_v43 = vadd.f32 %v3758_v53, %v3711_v41  ;;  %v3774_v41 = vld [vmem:[#allocation10 + $0x18] sm:$0xff]  }
 0x164   :  { %2827 = vmatprep.subr.bf16.mxu1 %v407_v57  ;;  %v404_v56 = vpack.c.bf16 %v376_v34, %v375_v36  ;;  %v307_v40 = vadd.f32 %v3762_v59, %v3707_v39  ;;  %v3770_v34 = vld [vmem:[#allocation10 + $0x10] sm:$0xff]   ;;  %v3776_v39 = vld [vmem:[#allocation10 + $0x20] sm:$0xff]   ;;  %v3786_v36 = vld [vmem:[#allocation10 + $0x38] sm:$0xff]  }
 0x165   :  { %v373_v61 = vmax.f32 %v323_v37, 0.0  ;;  %v372_v63 = vmax.f32 %v318_v49, 0.0  ;;  %v370_v15 = vmax.f32 %v310_v43, 0.0  ;;  %4173 = vst [vmem:[#allocation25_spill] sm:$0xff] %v3786_v36  ;;  %v3255_v37 = vld [vmem:[#allocation12 + $0x10] sm:$0xff]   ;;  %v3257_v49 = vld [vmem:[#allocation12] sm:$0xff]  }
 0x166   :  { %v369_v20 = vmax.f32 %v307_v40, 0.0  ;;  %2867 = vmatprep.subr.bf16.mxu0 %v3255_v37 }
 0x167   :  { %2828 = vmatpush3.bf16.msra.mxu1 %v407_v57  ;;  %v374_v57 = vmax.f32 %v326_v47, 0.0  ;;  %v3780_v47 = vld [vmem:[#allocation10 + $0x28] sm:$0xff]   ;;  %2868 = vmatpush3.bf16.msra.mxu0 %v3255_v37 }
 0x168   :  { %2829 = vmatprep.subr.bf16.mxu1 %v406_v5  ;;  %v401_v38 = vpack.c.bf16 %v370_v15, %v369_v20  ;;  %2869 = vmatprep.subr.bf16.mxu0 %v3256_v42 }
 0x169   :  { %v403_v46 = vpack.c.bf16 %v374_v57, %v373_v61  ;;  %v3259_v57 = vld [vmem:[#allocation13 + $0x30] sm:$0xff]   ;;  %v3261_v61 = vld [vmem:[#allocation13 + $0x20] sm:$0xff]  }
 0x16b   :  { %2830 = vmatpush3.bf16.msra.mxu1 %v406_v5  ;;  %v371_v5 = vmax.f32 %v315_v45, 0.0  ;;  %2870 = vmatpush3.bf16.msra.mxu0 %v3256_v42  ;;  %v3260_v45 = vld [vmem:[#allocation13 + $0x28] sm:$0xff]  }
 0x16c   :  { %2831 = vmatprep.subr.bf16.mxu1 %v405_v35  ;;  %2871 = vmatprep.subr.bf16.mxu0 %v3257_v49 }
 0x16d   :  { %v402_v12 = vpack.c.bf16 %v372_v63, %v371_v5  ;;  %v3262_v63 = vld [vmem:[#allocation13 + $0x18] sm:$0xff]  }
 0x16f   :  { %2832 = vmatpush3.bf16.msra.mxu1 %v405_v35  ;;  %v3782_v35 = vld [vmem:[#allocation10 + $0x30] sm:$0xff]   ;;  %2872 = vmatpush3.bf16.msra.mxu0 %v3257_v49 }
 0x170   :  { %2833 = vmatprep.subr.bf16.mxu1 %v404_v56  ;;  %4172 = vst [vmem:[#allocation24_spill] sm:$0xff] %v3782_v35 }
 0x173   :  { %2834 = vmatpush3.bf16.msra.mxu1 %v404_v56  ;;  %v3258_v56 = vld [vmem:[#allocation13 + $0x38] sm:$0xff]  }
 0x174   :  { %2835 = vmatprep.subr.bf16.mxu1 %v403_v46 }
 0x177   :  { %2836 = vmatpush3.bf16.msra.mxu1 %v403_v46  ;;  %v556_v46 = vstv %s555_s11 }
 0x178   :  { %2837 = vmatprep.subr.bf16.mxu1 %v402_v12  ;;  %v560_v40 = vmul.f32 %v556_v46, %v3669_v19  ;;  %v558_v15 = vmul.f32 %v556_v46, %v3675_v22  ;;  %v559_v20 = vmul.f32 %v556_v46, %v3667_v18  ;;  %v561_v19 = vmul.f32 %v556_v46, %v3663_v16 }
 0x179   :  { %v563_v22 = vmul.f32 %v556_v46, %v3657_v13  ;;  %v565_v16 = vmul.f32 %v556_v46, %v3646_v8  ;;  %v567_v13 = vmul.f32 %v556_v46, %v3642_v6  ;;  %v569_v8 = vmul.f32 %v556_v46, %v3634_v2  ;;  %v3264_v2 = vld [vmem:[#allocation13 + $0x8] sm:$0xff]  }
 0x17a   :  { %v571_v6 = vmul.f32 %v556_v46, %v3630_v0  ;;  %v3265_v0 = vld [vmem:[#allocation13] sm:$0xff]  }
 0x17b   :  { %2838 = vmatpush3.bf16.msra.mxu1 %v402_v12  ;;  %v557_v12 = vmul.f32 %v556_v46, %v3673_v21  ;;  %v562_v21 = vmul.f32 %v556_v46, %v3665_v17  ;;  %v566_v17 = vmul.f32 %v556_v46, %v3650_v10  ;;  %v570_v10 = vmul.f32 %v556_v46, %v3638_v4 }
 0x17c   :  { %2839 = vmatprep.subr.bf16.mxu1 %v401_v38 }
 0x17f   :  { %2840 = vmatpush3.bf16.msra.mxu1 %v401_v38 }
 0x180   :  { %2889 = vmatprep.subr.bf16.mxu1 %v3258_v56 }
 0x182   :  { %2842 = vmatmul.mubr.bf16.vlgmr.msra.gmra.mxu1 %v3768_v23 }
 0x183   :  { %2845 = vmatprep.mubr.bf16.mxu1 %v3770_v34  ;;  %2890 = vmatpush3.bf16.msra.mxu1 %v3258_v56 }
 0x184   :  { %2891 = vmatprep.subr.bf16.mxu1 %v3259_v57 }
 0x187   :  { %2892 = vmatpush3.bf16.msra.mxu1 %v3259_v57 }
 0x188   :  { %2893 = vmatprep.subr.bf16.mxu1 %v3260_v45 }
 0x18a   :  { %2846 = vmatmul.mubr.bf16.gmra.mxu1 %v3774_v41 }
 0x18b   :  { %2849 = vmatprep.mubr.bf16.mxu1 %v3776_v39  ;;  %2894 = vmatpush3.bf16.msra.mxu1 %v3260_v45 }
 0x18c   :  { %2895 = vmatprep.subr.bf16.mxu1 %v3261_v61 }
 0x18f   :  { %2896 = vmatpush3.bf16.msra.mxu1 %v3261_v61 }
 0x190   :  { %2897 = vmatprep.subr.bf16.mxu1 %v3262_v63 }
 0x192   :  { %2850 = vmatmul.mubr.bf16.gmra.mxu1 %v3780_v47 }
 0x193   :  { %2853 = vmatprep.mubr.bf16.mxu1 %v3782_v35  ;;  %2898 = vmatpush3.bf16.msra.mxu1 %v3262_v63  ;;  %v564_v35 = vmul.f32 %v556_v46, %v3659_v14  ;;  %v568_v14 = vmul.f32 %v556_v46, %v3644_v7  ;;  %v572_v7 = vmul.f32 %v556_v46, %v3632_v1  ;;  %v3263_v1 = vld [vmem:[#allocation13 + $0x10] sm:$0xff]  }
 0x194   :  { %2899 = vmatprep.subr.bf16.mxu1 %v3263_v1 }
 0x197   :  { %2900 = vmatpush3.bf16.msra.mxu1 %v3263_v1 }
 0x198   :  { %2901 = vmatprep.subr.bf16.mxu1 %v3264_v2 }
 0x19a   :  { %2854 = vmatmul.mubr.bf16.gmra.mxu1 %v3786_v36 }
 0x19b   :  { %2902 = vmatpush3.bf16.msra.mxu1 %v3264_v2 }
 0x19c   :  { %2903 = vmatprep.subr.bf16.mxu1 %v3265_v0 }
 0x19f   :  { %2904 = vmatpush3.bf16.msra.mxu1 %v3265_v0 }
 0x242   :  { %v2843_v43 = vpop.f32.mrf.mxu1 }
 0x243   :  { %v575_v57 = vadd.f32 %v2843_v43, %v559_v20 }
 0x244   :  { %v491_v5 = vpop.f32.mrf.mxu1 }
 0x245   :  { %v573_v49 = vadd.f32 %v557_v12, %v491_v5 }
 0x246   :  { %v2844_v38 = vpop.f32.mrf.mxu1 }
 0x247   :  { %v576_v37 = vadd.f32 %v2844_v38, %v560_v40 }
 0x248   :  { %v494_v42 = vpop.f32.mrf.mxu1 }
 0x249   :  { %v574_v56 = vadd.f32 %v558_v15, %v494_v42  ;;  %v590_v63 = vpack.c.bf16 %v576_v37, %v575_v57 }
 0x24a   :  { %v2847_v45 = vpop.f32.mrf.mxu1 }
 0x24b   :  { %v589_v61 = vpack.c.bf16 %v574_v56, %v573_v49  ;;  %v579_v43 = vadd.f32 %v2847_v45, %v563_v22 }
 0x24c   :  { %v507_v36 = vpop.f32.mrf.mxu1 }
 0x24d   :  { %2873 = vmatprep.mubr.bf16.mxu0 %v589_v61  ;;  %v577_v5 = vadd.f32 %v561_v19, %v507_v36 }
 0x24e   :  { %v2848_v18 = vpop.f32.mrf.mxu1  ;;  %2874 = vmatmul.mubr.bf16.vlgmr.msra.gmra.mxu0 %v590_v63 }
 0x24f   :  { %v580_v40 = vadd.f32 %v2848_v18, %v564_v35 }
 0x250   :  { %v510_v38 = vpop.f32.mrf.mxu1 }
 0x251   :  { %v578_v12 = vadd.f32 %v562_v21, %v510_v38  ;;  %v592_v37 = vpack.c.bf16 %v580_v40, %v579_v43 }
 0x252   :  { %v2851_v15 = vpop.f32.mrf.mxu1 }
 0x253   :  { %v591_v20 = vpack.c.bf16 %v578_v12, %v577_v5  ;;  %v583_v45 = vadd.f32 %v2851_v15, %v567_v13 }
 0x254   :  { %v523_v42 = vpop.f32.mrf.mxu1 }
 0x255   :  { %2877 = vmatprep.mubr.bf16.mxu0 %v591_v20  ;;  %v581_v36 = vadd.f32 %v565_v16, %v523_v42  ;;  %v2475_v20 = vld [vmem:[%s4131_s6] ss:$0 sm:$0xff] }
 0x256   :  { %v2852_v49 = vpop.f32.mrf.mxu1  ;;  %2878 = vmatmul.mubr.bf16.gmra.mxu0 %v592_v37 }
 0x257   :  { %v584_v35 = vadd.f32 %v2852_v49, %v568_v14 }
 0x258   :  { %v526_v56 = vpop.f32.mrf.mxu1 }
 0x259   :  { %v582_v57 = vadd.f32 %v566_v17, %v526_v56  ;;  %v594_v19 = vpack.c.bf16 %v584_v35, %v583_v45 }
 0x25a   :  { %v2855_v61 = vpop.f32.mrf.mxu1 }
 0x25b   :  { %v593_v63 = vpack.c.bf16 %v582_v57, %v581_v36  ;;  %v587_v12 = vadd.f32 %v2855_v61, %v571_v6 }
 0x25c   :  { %v539_v21 = vpop.f32.mrf.mxu1 }
 0x25d   :  { %2881 = vmatprep.mubr.bf16.mxu0 %v593_v63  ;;  %v585_v38 = vadd.f32 %v569_v8, %v539_v21 }
 0x25e   :  { %v2856_v22 = vpop.f32.mrf.mxu1  ;;  %2882 = vmatmul.mubr.bf16.gmra.mxu0 %v594_v19 }
 0x25f   :  { %v588_v18 = vadd.f32 %v2856_v22, %v572_v7 }
 0x260   :  { %v542_v40 = vpop.f32.mrf.mxu1 }
 0x261   :  { %v586_v5 = vadd.f32 %v570_v10, %v542_v40  ;;  %v596_v15 = vpack.c.bf16 %v588_v18, %v587_v12 }
 0x263   :  { %v595_v43 = vpack.c.bf16 %v586_v5, %v585_v38 }
 0x265   :  { %2885 = vmatprep.mubr.bf16.mxu0 %v595_v43 }
 0x266   :  { %2886 = vmatmul.mubr.bf16.gmra.mxu0 %v596_v15 }
 0x267   :  { %2937 = vmatprep.mubr.bf16.mxu0 %v3652_v11 }
 0x30e   :  { %v2875_v4 = vpop.f32.mrf.mxu0 }
 0x30f   :  { %v711_v16 = vadd.f32 %v2875_v4, %v2475_v20 }
 0x310   :  { %v702_v46 = vpop.f32.mrf.mxu0 }
 0x311   :  { %v703_v42 = vadd.f32 %v2475_v20, %v702_v46  ;;  %v767_v36 = vmax.f32 %v711_v16, 0.0 }
 0x312   :  { %v2876_v37 = vpop.f32.mrf.mxu0 }
 0x313   :  { %v714_v14 = vadd.f32 %v2876_v37, %v2475_v20  ;;  %v765_v35 = vmax.f32 %v703_v42, 0.0 }
 0x314   :  { %v705_v11 = vpop.f32.mrf.mxu0 }
 0x315   :  { %v706_v17 = vadd.f32 %v2475_v20, %v705_v11  ;;  %v768_v13 = vmax.f32 %v714_v14, 0.0 }
 0x316   :  { %v2879_v49 = vpop.f32.mrf.mxu0 }
 0x317   :  { %v766_v56 = vmax.f32 %v706_v17, 0.0  ;;  %v782_v61 = vpack.c.bf16 %v768_v13, %v767_v36  ;;  %v727_v7 = vadd.f32 %v2879_v49, %v2475_v20 }
 0x318   :  { %v718_v57 = vpop.f32.mrf.mxu0 }
 0x319   :  { %v781_v45 = vpack.c.bf16 %v766_v56, %v765_v35  ;;  %v719_v19 = vadd.f32 %v2475_v20, %v718_v57  ;;  %v771_v38 = vmax.f32 %v727_v7, 0.0 }
 0x31a   :  { %v2880_v63 = vpop.f32.mrf.mxu0 }
 0x31b   :  { %v730_v21 = vadd.f32 %v2880_v63, %v2475_v20  ;;  %2905 = vmatprep.mubr.bf16.mxu1 %v781_v45  ;;  %v769_v18 = vmax.f32 %v719_v19, 0.0 }
 0x31c   :  { %v721_v8 = vpop.f32.mrf.mxu0  ;;  %2906 = vmatmul.mubr.bf16.vlgmr.msra.gmra.mxu1 %v782_v61 }
 0x31d   :  { %v722_v10 = vadd.f32 %v2475_v20, %v721_v8  ;;  %v772_v6 = vmax.f32 %v730_v21, 0.0 }
 0x31e   :  { %v2883_v22 = vpop.f32.mrf.mxu0 }
 0x31f   :  { %v770_v40 = vmax.f32 %v722_v10, 0.0  ;;  %v784_v43 = vpack.c.bf16 %v772_v6, %v771_v38  ;;  %v743_v0 = vadd.f32 %v2883_v22, %v2475_v20 }
 0x320   :  { %v734_v5 = vpop.f32.mrf.mxu0 }
 0x321   :  { %v783_v12 = vpack.c.bf16 %v770_v40, %v769_v18  ;;  %v735_v1 = vadd.f32 %v2475_v20, %v734_v5  ;;  %v775_v11 = vmax.f32 %v743_v0, 0.0 }
 0x322   :  { %v2884_v15 = vpop.f32.mrf.mxu0 }
 0x323   :  { %v746_v2 = vadd.f32 %v2884_v15, %v2475_v20  ;;  %2909 = vmatprep.mubr.bf16.mxu1 %v783_v12  ;;  %v773_v14 = vmax.f32 %v735_v1, 0.0 }
 0x324   :  { %v737_v4 = vpop.f32.mrf.mxu0  ;;  %2910 = vmatmul.mubr.bf16.gmra.mxu1 %v784_v43 }
 0x325   :  { %v738_v46 = vadd.f32 %v2475_v20, %v737_v4  ;;  %v776_v37 = vmax.f32 %v746_v2, 0.0  ;;  %v2484_v4 = vld [vmem:[%s4133_s8] ss:$0 sm:$0xff] }
 0x326   :  { %v2887_v42 = vpop.f32.mrf.mxu0 }
 0x327   :  { %v774_v16 = vmax.f32 %v738_v46, 0.0  ;;  %v786_v49 = vpack.c.bf16 %v776_v37, %v775_v11  ;;  %v759_v57 = vadd.f32 %v2887_v42, %v2475_v20 }
 0x328   :  { %v750_v17 = vpop.f32.mrf.mxu0 }
 0x329   :  { %v785_v13 = vpack.c.bf16 %v774_v16, %v773_v14  ;;  %v751_v56 = vadd.f32 %v2475_v20, %v750_v17  ;;  %v779_v7 = vmax.f32 %v759_v57, 0.0 }
 0x32a   :  { %v2888_v35 = vpop.f32.mrf.mxu0 }
 0x32b   :  { %v762_v36 = vadd.f32 %v2888_v35, %v2475_v20  ;;  %2913 = vmatprep.mubr.bf16.mxu1 %v785_v13  ;;  %v777_v19 = vmax.f32 %v751_v56, 0.0 }
 0x32c   :  { %v753_v45 = vpop.f32.mrf.mxu0  ;;  %2914 = vmatmul.mubr.bf16.gmra.mxu1 %v786_v49 }
 0x32d   :  { %v754_v61 = vadd.f32 %v2475_v20, %v753_v45  ;;  %v780_v63 = vmax.f32 %v762_v36, 0.0 }
 0x32f   :  { %v778_v21 = vmax.f32 %v754_v61, 0.0  ;;  %v788_v10 = vpack.c.bf16 %v780_v63, %v779_v7 }
 0x331   :  { %v787_v8 = vpack.c.bf16 %v778_v21, %v777_v19 }
 0x333   :  { %2917 = vmatprep.mubr.bf16.mxu1 %v787_v8 }
 0x334   :  { %2918 = vmatmul.mubr.bf16.gmra.mxu1 %v788_v10 }
 0x335   :  { %2969 = vmatprep.mubr.bf16.mxu1 %v3702_v32 }
 0x3dc   :  { %v2907_v6 = vpop.f32.mrf.mxu1 }
 0x3de   :  { %v894_v22 = vpop.f32.mrf.mxu1 }
 0x3e0   :  { %v2908_v18 = vpop.f32.mrf.mxu1 }
 0x3e2   :  { %v897_v40 = vpop.f32.mrf.mxu1 }
 0x3e4   :  { %v2911_v38 = vpop.f32.mrf.mxu1 }
 0x3e6   :  { %v910_v5 = vpop.f32.mrf.mxu1 }
 0x3e8   :  { %v2912_v12 = vpop.f32.mrf.mxu1 }
 0x3e9   :  { %v3843_v7 = vadd.f32 %v2912_v12, %v2484_v4 }
 0x3ea   :  { %v913_v43 = vpop.f32.mrf.mxu1 }
 0x3ec   :  { %v2915_v15 = vpop.f32.mrf.mxu1 }
 0x3ed   :  { %v3825_v35 = vadd.f32 %v2915_v15, %v2484_v4  ;;  %v3850_v15 = vadd.f32 %v2911_v38, %v2484_v4  ;;  %v3863_v38 = vadd.f32 %v2908_v18, %v2484_v4 }
 0x3ee   :  { %v926_v20 = vpop.f32.mrf.mxu1 }
 0x3ef   :  { %v4148_v19 = vmax.f32 %v3825_v35, 0.0  ;;  %v3841_v21 = vadd.f32 %v2484_v4, %v926_v20  ;;  %v3854_v20 = vadd.f32 %v2484_v4, %v913_v43 }
 0x3f0   :  { %v2916_v1 = vpop.f32.mrf.mxu1 }
 0x3f1   :  { %v3819_v11 = vadd.f32 %v2916_v1, %v2484_v4  ;;  %v4146_v1 = vmax.f32 %v3841_v21, 0.0  ;;  %v4149_v43 = vmax.f32 %v3854_v20, 0.0 }
 0x3f2   :  { %v929_v2 = vpop.f32.mrf.mxu1 }
 0x3f3   :  { %v4147_v45 = vmax.f32 %v3819_v11, 0.0  ;;  %v3834_v61 = vadd.f32 %v2484_v4, %v929_v2  ;;  %v4151_v2 = vmax.f32 %v3843_v7, 0.0 }
 0x3f4   :  { %v2919_v0 = vpop.f32.mrf.mxu1 }
 0x3f5   :  { %v3813_v37 = vadd.f32 %v2919_v0, %v2484_v4  ;;  %v978_v8 = vpack.c.bf16 %v4147_v45, %v4148_v19  ;;  %v4145_v10 = vmax.f32 %v3834_v61, 0.0  ;;  %v4152_v0 = vmax.f32 %v3850_v15, 0.0 }
 0x3f6   :  { %v942_v46 = vpop.f32.mrf.mxu1 }
 0x3f7   :  { %v3815_v42 = vadd.f32 %v2484_v4, %v942_v46  ;;  %v4144_v17 = vmax.f32 %v3813_v37, 0.0  ;;  %v977_v12 = vpack.c.bf16 %v4145_v10, %v4146_v1  ;;  %v3861_v46 = vadd.f32 %v2484_v4, %v910_v5 }
 0x3f8   :  { %v2920_v32 = vpop.f32.mrf.mxu1  ;;  %v3874_v5 = vadd.f32 %v2484_v4, %v897_v40 }
 0x3f9   :  { %v3817_v14 = vadd.f32 %v2920_v32, %v2484_v4  ;;  %v4142_v56 = vmax.f32 %v3815_v42, 0.0  ;;  %v976_v32 = vpack.c.bf16 %v4151_v2, %v4152_v0 }
 0x3fa   :  { %v945_v16 = vpop.f32.mrf.mxu1 }
 0x3fb   :  { %v4143_v13 = vmax.f32 %v3817_v14, 0.0  ;;  %v3823_v49 = vadd.f32 %v2484_v4, %v945_v16  ;;  %v3870_v16 = vadd.f32 %v2907_v6, %v2484_v4 }
 0x3fd   :  { %4174 = vst [vmem:[#allocation26_spill] sm:$0xff] %v3823_v49  ;;  %v980_v36 = vpack.c.bf16 %v4143_v13, %v4144_v17  ;;  %v4141_v57 = vmax.f32 %v3823_v49, 0.0 }
 0x3ff   :  { %v979_v63 = vpack.c.bf16 %v4141_v57, %v4142_v56  ;;  %2921 = vmatprep.subr.bf16.mxu0 %v980_v36  ;;  %v3881_v57 = vadd.f32 %v2484_v4, %v894_v22  ;;  %v3266_v22 = vld [vmem:[#allocation12 + $0x78] sm:$0xff]   ;;  %v3267_v4 = vld [vmem:[#allocation12 + $0x70] sm:$0xff]  }
 0x400   :  { %2922 = vmatpush3.bf16.msra.mxu0 %v980_v36  ;;  %v4150_v36 = vmax.f32 %v3861_v46, 0.0 }
 0x401   :  { %2923 = vmatprep.subr.bf16.mxu0 %v979_v63  ;;  %v4154_v40 = vmax.f32 %v3881_v57, 0.0 }
 0x402   :  { %v975_v18 = vpack.c.bf16 %v4149_v43, %v4150_v36 }
 0x404   :  { %2924 = vmatpush3.bf16.msra.mxu0 %v979_v63  ;;  %v4155_v63 = vmax.f32 %v3863_v38, 0.0 }
 0x405   :  { %2925 = vmatprep.subr.bf16.mxu0 %v978_v8 }
 0x408   :  { %2926 = vmatpush3.bf16.msra.mxu0 %v978_v8  ;;  %v4156_v8 = vmax.f32 %v3870_v16, 0.0 }
 0x409   :  { %2927 = vmatprep.subr.bf16.mxu0 %v977_v12 }
 0x40a   :  { %v974_v6 = vpack.c.bf16 %v4155_v63, %v4156_v8 }
 0x40c   :  { %2928 = vmatpush3.bf16.msra.mxu0 %v977_v12  ;;  %v4153_v12 = vmax.f32 %v3874_v5, 0.0 }
 0x40d   :  { %2929 = vmatprep.subr.bf16.mxu0 %v976_v32 }
 0x410   :  { %2930 = vmatpush3.bf16.msra.mxu0 %v976_v32  ;;  %v973_v32 = vpack.c.bf16 %v4153_v12, %v4154_v40 }
 0x411   :  { %2931 = vmatprep.subr.bf16.mxu0 %v975_v18 }
 0x414   :  { %2932 = vmatpush3.bf16.msra.mxu0 %v975_v18  ;;  %v3268_v18 = vld [vmem:[#allocation12 + $0x68] sm:$0xff]  }
 0x415   :  { %2933 = vmatprep.subr.bf16.mxu0 %v974_v6 }
 0x418   :  { %2934 = vmatpush3.bf16.msra.mxu0 %v974_v6 }
 0x419   :  { %2935 = vmatprep.subr.bf16.mxu0 %v973_v32 }
 0x41c   :  { %2936 = vmatpush3.bf16.msra.mxu0 %v973_v32 }
 0x41d   :  { %2985 = vmatprep.subr.bf16.mxu0 %v3266_v22 }
 0x41f   :  { %2938 = vmatmul.mubr.bf16.vlgmr.msra.gmra.mxu0 %v3681_v25  ;;  %v3269_v25 = vld [vmem:[#allocation12 + $0x60] sm:$0xff]  }
 0x420   :  { %2941 = vmatprep.mubr.bf16.mxu0 %v3683_v26  ;;  %2986 = vmatpush3.bf16.msra.mxu0 %v3266_v22  ;;  %v3270_v26 = vld [vmem:[#allocation12 + $0x58] sm:$0xff]  }
 0x421   :  { %2987 = vmatprep.subr.bf16.mxu0 %v3267_v4 }
 0x424   :  { %2988 = vmatpush3.bf16.msra.mxu0 %v3267_v4 }
 0x425   :  { %2989 = vmatprep.subr.bf16.mxu0 %v3268_v18 }
 0x427   :  { %2942 = vmatmul.mubr.bf16.gmra.mxu0 %v3687_v27 }
 0x428   :  { %2945 = vmatprep.mubr.bf16.mxu0 %v3689_v28  ;;  %2990 = vmatpush3.bf16.msra.mxu0 %v3268_v18 }
 0x429   :  { %2991 = vmatprep.subr.bf16.mxu0 %v3269_v25 }
 0x42c   :  { %2992 = vmatpush3.bf16.msra.mxu0 %v3269_v25 }
 0x42d   :  { %2993 = vmatprep.subr.bf16.mxu0 %v3270_v26 }
 0x42f   :  { %2946 = vmatmul.mubr.bf16.gmra.mxu0 %v3693_v29 }
 0x430   :  { %2949 = vmatprep.mubr.bf16.mxu0 %v3695_v30  ;;  %2994 = vmatpush3.bf16.msra.mxu0 %v3270_v26 }
 0x437   :  { %2950 = vmatmul.mubr.bf16.gmra.mxu0 %v3699_v31 }
 0x4df   :  { %v2939_v27 = vpop.f32.mrf.mxu0 }
 0x4e1   :  { %v1015_v28 = vpop.f32.mrf.mxu0 }
 0x4e3   :  { %v2940_v29 = vpop.f32.mrf.mxu0 }
 0x4e5   :  { %v1018_v30 = vpop.f32.mrf.mxu0 }
 0x4e7   :  { %v2943_v31 = vpop.f32.mrf.mxu0 }
 0x4e9   :  { %v1031_v6 = vpop.f32.mrf.mxu0 }
 0x4eb   :  { %v2944_v32 = vpop.f32.mrf.mxu0 }
 0x4ed   :  { %v1034_v56 = vpop.f32.mrf.mxu0 }
 0x4ef   :  { %v2947_v22 = vpop.f32.mrf.mxu0 }
 0x4f0   :  { %v1056_v12 = vadd.f32 %v2947_v22, %v3726_v62 }
 0x4f1   :  { %v1047_v13 = vpop.f32.mrf.mxu0 }
 0x4f3   :  { %v2948_v17 = vpop.f32.mrf.mxu0 }
 0x4f4   :  { %v1059_v43 = vadd.f32 %v2948_v17, %v3721_v58  ;;  %v1043_v17 = vadd.f32 %v2944_v32, %v3737_v51 }
 0x4f5   :  { %v1050_v4 = vpop.f32.mrf.mxu0 }
 0x4f6   :  { %v1089_v49 = vmax.f32 %v1059_v43, 0.0 }
 0x4f7   :  { %v2951_v10 = vpop.f32.mrf.mxu0 }
 0x4f8   :  { %v1072_v18 = vadd.f32 %v2951_v10, %v3715_v52  ;;  %v1051_v10 = vadd.f32 %v3730_v9, %v1050_v4  ;;  %v1016_v4 = vadd.f32 %v3762_v59, %v1015_v28  ;;  %v4176_v28 = vld [vmem:[#allocation25_spill] sm:$0xff] }
 0x4f9   :  { %v1063_v1 = vpop.f32.mrf.mxu0 }
 0x4fa   :  { %v1064_v25 = vadd.f32 %v3717_v54, %v1063_v1  ;;  %v1092_v36 = vmax.f32 %v1072_v18, 0.0  ;;  %v1088_v1 = vmax.f32 %v1056_v12, 0.0 }
 0x4fb   :  { %v2952_v45 = vpop.f32.mrf.mxu0 }
 0x4fc   :  { %v1075_v26 = vadd.f32 %v2952_v45, %v3719_v55  ;;  %v1090_v40 = vmax.f32 %v1064_v25, 0.0  ;;  %v1048_v45 = vadd.f32 %v3734_v33, %v1047_v13  ;;  %v1099_v18 = vpack.c.bf16 %v1089_v49, %v1088_v1  ;;  %v3272_v1 = vld [vmem:[#allocation12 + $0x48] sm:$0xff]  }
 0x4fd   :  { %v1066_v19 = vpop.f32.mrf.mxu0  ;;  %v1027_v13 = vadd.f32 %v2940_v29, %v3749_v24  ;;  %v1078_v29 = vmax.f32 %v1016_v4, 0.0 }
 0x4fe   :  { %v1093_v2 = vmax.f32 %v1075_v26, 0.0  ;;  %v1067_v0 = vadd.f32 %v3724_v60, %v1066_v19  ;;  %v1087_v26 = vmax.f32 %v1051_v10, 0.0  ;;  %v1040_v19 = vadd.f32 %v2943_v31, %v3740_v48 }
 0x4ff   :  { %v1086_v22 = vmax.f32 %v1048_v45, 0.0  ;;  %v1019_v31 = vadd.f32 %v3758_v53, %v1018_v30  ;;  %v3271_v30 = vld [vmem:[#allocation12 + $0x50] sm:$0xff]   ;;  %v3273_v45 = vld [vmem:[#allocation12 + $0x40] sm:$0xff]  }
 0x500   :  { %v1101_v63 = vpack.c.bf16 %v1093_v2, %v1092_v36  ;;  %v1091_v8 = vmax.f32 %v1067_v0, 0.0  ;;  %v1085_v2 = vmax.f32 %v1043_v17, 0.0  ;;  %v1035_v0 = vadd.f32 %v3744_v3, %v1034_v56  ;;  %2995 = vmatprep.subr.bf16.mxu0 %v3271_v30 }
 0x501   :  { %v1098_v43 = vpack.c.bf16 %v1087_v26, %v1086_v22  ;;  %v1084_v36 = vmax.f32 %v1040_v19, 0.0  ;;  %v1079_v25 = vmax.f32 %v1019_v31, 0.0  ;;  %2996 = vmatpush3.bf16.msra.mxu0 %v3271_v30  ;;  %v4177_v19 = vmax.f32 %v3870_v16, 0.0 }
 0x502   :  { %v1100_v52 = vpack.c.bf16 %v1091_v8, %v1090_v40  ;;  %2953 = vmatprep.subr.bf16.mxu1 %v1101_v63  ;;  %v1083_v12 = vmax.f32 %v1035_v0, 0.0  ;;  %v1081_v40 = vmax.f32 %v1027_v13, 0.0  ;;  %2997 = vmatprep.subr.bf16.mxu0 %v3272_v1  ;;  %v4184_v30 = vmax.f32 %v3854_v20, 0.0 }
 0x503   :  { %2954 = vmatpush3.bf16.msra.mxu1 %v1101_v63  ;;  %v1032_v63 = vadd.f32 %v3747_v50, %v1031_v6  ;;  %v1097_v8 = vpack.c.bf16 %v1085_v2, %v1084_v36  ;;  %v1094_v10 = vpack.c.bf16 %v1079_v25, %v1078_v29  ;;  %v4178_v2 = vmax.f32 %v3863_v38, 0.0 }
 0x504   :  { %2955 = vmatprep.subr.bf16.mxu1 %v1100_v52  ;;  %v4182_v25 = vmax.f32 %v3843_v7, 0.0  ;;  %v4185_v7 = vmax.f32 %v3825_v35, 0.0  ;;  %v4187_v20 = vmax.f32 %v3841_v21, 0.0 }
 0x505   :  { %v1082_v49 = vmax.f32 %v1032_v63, 0.0  ;;  %2998 = vmatpush3.bf16.msra.mxu0 %v3272_v1  ;;  %v4179_v63 = vmax.f32 %v3881_v57, 0.0 }
 0x506   :  { %2999 = vmatprep.subr.bf16.mxu0 %v3273_v45 }
 0x507   :  { %2956 = vmatpush3.bf16.msra.mxu1 %v1100_v52  ;;  %v1024_v52 = vadd.f32 %v2939_v27, %v3752_v44  ;;  %v1096_v32 = vpack.c.bf16 %v1083_v12, %v1082_v49  ;;  %v4175_v27 = vld [vmem:[#allocation24_spill] sm:$0xff]  ;;  %v4180_v12 = vmax.f32 %v3874_v5, 0.0  ;;  %v4183_v5 = vmax.f32 %v3861_v46, 0.0 }
 0x508   :  { %2957 = vmatprep.subr.bf16.mxu1 %v1099_v18 }
 0x509   :  { %v1080_v56 = vmax.f32 %v1024_v52, 0.0  ;;  %3000 = vmatpush3.bf16.msra.mxu0 %v3273_v45 }
 0x50b   :  { %2958 = vmatpush3.bf16.msra.mxu1 %v1099_v18  ;;  %v1095_v6 = vpack.c.bf16 %v1081_v40, %v1080_v56  ;;  %v1201_v18 = vstv %s1200_s15 }
 0x50c   :  { %2959 = vmatprep.subr.bf16.mxu1 %v1098_v43  ;;  %v1204_v22 = vmul.f32 %v1201_v18, %v4177_v19  ;;  %v1205_v0 = vmul.f32 %v1201_v18, %v4178_v2  ;;  %v1202_v13 = vmul.f32 %v1201_v18, %v4179_v63  ;;  %v1203_v52 = vmul.f32 %v1201_v18, %v4180_v12 }
 0x50d   :  { %v1209_v29 = vmul.f32 %v1201_v18, %v4182_v25  ;;  %v1207_v1 = vmul.f32 %v1201_v18, %v4184_v30  ;;  %v1210_v2 = vmul.f32 %v1201_v18, %v4187_v20 }
 0x50f   :  { %2960 = vmatpush3.bf16.msra.mxu1 %v1098_v43 }
 0x510   :  { %2961 = vmatprep.subr.bf16.mxu1 %v1097_v8 }
 0x513   :  { %2962 = vmatpush3.bf16.msra.mxu1 %v1097_v8 }
 0x514   :  { %2963 = vmatprep.subr.bf16.mxu1 %v1096_v32 }
 0x517   :  { %2964 = vmatpush3.bf16.msra.mxu1 %v1096_v32 }
 0x518   :  { %2965 = vmatprep.subr.bf16.mxu1 %v1095_v6 }
 0x51b   :  { %2966 = vmatpush3.bf16.msra.mxu1 %v1095_v6  ;;  %v4181_v6 = vmax.f32 %v3850_v15, 0.0 }
 0x51c   :  { %2967 = vmatprep.subr.bf16.mxu1 %v1094_v10 }
 0x51d   :  { %v1208_v38 = vmul.f32 %v1201_v18, %v4181_v6  ;;  %v4192_v6 = vld [vmem:[#allocation26_spill] sm:$0xff] }
 0x51f   :  { %2968 = vmatpush3.bf16.msra.mxu1 %v1094_v10 }
 0x522   :  { %2970 = vmatmul.mubr.bf16.vlgmr.msra.gmra.mxu1 %v3768_v23  ;;  %v3274_v23 = vld [vmem:[#allocation13 + $0x78] sm:$0xff]  }
 0x523   :  { %2973 = vmatprep.mubr.bf16.mxu1 %v3770_v34  ;;  %v3275_v34 = vld [vmem:[#allocation13 + $0x70] sm:$0xff]   ;;  %3017 = vmatprep.subr.bf16.mxu1 %v3274_v23 }
 0x524   :  { %3018 = vmatpush3.bf16.msra.mxu1 %v3274_v23 }
 0x525   :  { %3019 = vmatprep.subr.bf16.mxu1 %v3275_v34 }
 0x528   :  { %3020 = vmatpush3.bf16.msra.mxu1 %v3275_v34 }
 0x52a   :  { %2974 = vmatmul.mubr.bf16.gmra.mxu1 %v3774_v41  ;;  %v3276_v41 = vld [vmem:[#allocation13 + $0x68] sm:$0xff]  }
 0x52b   :  { %2977 = vmatprep.mubr.bf16.mxu1 %v3776_v39  ;;  %3021 = vmatprep.subr.bf16.mxu1 %v3276_v41  ;;  %v3277_v39 = vld [vmem:[#allocation13 + $0x60] sm:$0xff]  }
 0x52c   :  { %3022 = vmatpush3.bf16.msra.mxu1 %v3276_v41 }
 0x52d   :  { %3023 = vmatprep.subr.bf16.mxu1 %v3277_v39 }
 0x530   :  { %3024 = vmatpush3.bf16.msra.mxu1 %v3277_v39 }
 0x532   :  { %2978 = vmatmul.mubr.bf16.gmra.mxu1 %v3780_v47  ;;  %v3278_v47 = vld [vmem:[#allocation13 + $0x58] sm:$0xff]  }
 0x533   :  { %2981 = vmatprep.mubr.bf16.mxu1 %v4175_v27  ;;  %3025 = vmatprep.subr.bf16.mxu1 %v3278_v47  ;;  %v1206_v27 = vmul.f32 %v1201_v18, %v4183_v5 }
 0x534   :  { %3026 = vmatpush3.bf16.msra.mxu1 %v3278_v47 }
 0x53a   :  { %2982 = vmatmul.mubr.bf16.gmra.mxu1 %v4176_v28 }
 0x5e2   :  { %v2971_v17 = vpop.f32.mrf.mxu1 }
 0x5e3   :  { %v1220_v36 = vadd.f32 %v2971_v17, %v1204_v22  ;;  %v1212_v17 = vmul.f32 %v1201_v18, %v4185_v7 }
 0x5e4   :  { %v1136_v26 = vpop.f32.mrf.mxu1 }
 0x5e5   :  { %v1218_v40 = vadd.f32 %v1202_v13, %v1136_v26  ;;  %v4186_v26 = vmax.f32 %v3819_v11, 0.0  ;;  %v4189_v11 = vmax.f32 %v3813_v37, 0.0 }
 0x5e6   :  { %v2972_v43 = vpop.f32.mrf.mxu1 }
 0x5e7   :  { %v1221_v8 = vadd.f32 %v2972_v43, %v1205_v0  ;;  %v1213_v19 = vmul.f32 %v1201_v18, %v4186_v26  ;;  %v4188_v43 = vmax.f32 %v3834_v61, 0.0  ;;  %v4191_v61 = vmax.f32 %v3815_v42, 0.0  ;;  %v3281_v42 = vld [vmem:[#allocation13 + $0x40] sm:$0xff]  }
 0x5e8   :  { %v1139_v49 = vpop.f32.mrf.mxu1 }
 0x5e9   :  { %v1235_v31 = vpack.c.bf16 %v1221_v8, %v1220_v36  ;;  %v1219_v32 = vadd.f32 %v1203_v52, %v1139_v49  ;;  %v1211_v36 = vmul.f32 %v1201_v18, %v4188_v43 }
 0x5ea   :  { %v2975_v56 = vpop.f32.mrf.mxu1 }
 0x5eb   :  { %v1234_v4 = vpack.c.bf16 %v1219_v32, %v1218_v40  ;;  %v1224_v10 = vadd.f32 %v2975_v56, %v1208_v38  ;;  %v1216_v40 = vmul.f32 %v1201_v18, %v4189_v11  ;;  %v4193_v38 = vmax.f32 %v4192_v6, 0.0 }
 0x5ec   :  { %v1152_v16 = vpop.f32.mrf.mxu1 }
 0x5ed   :  { %3001 = vmatprep.mubr.bf16.mxu0 %v1234_v4  ;;  %v1222_v23 = vadd.f32 %v1206_v27, %v1152_v16  ;;  %v1214_v4 = vmul.f32 %v1201_v18, %v4191_v61  ;;  %v1215_v25 = vmul.f32 %v1201_v18, %v4193_v38  ;;  %v3306_v27 = vld [vmem:[#allocation9] sm:$0xff]  }
 0x5ee   :  { %v2976_v57 = vpop.f32.mrf.mxu1  ;;  %3002 = vmatmul.mubr.bf16.vlgmr.msra.gmra.mxu0 %v1235_v31  ;;  %v4190_v31 = vmax.f32 %v3817_v14, 0.0  ;;  %v3279_v14 = vld [vmem:[#allocation13 + $0x50] sm:$0xff]  }
 0x5ef   :  { %v1225_v28 = vadd.f32 %v2976_v57, %v1209_v29  ;;  %3027 = vmatprep.subr.bf16.mxu1 %v3279_v14 }
 0x5f0   :  { %v1155_v45 = vpop.f32.mrf.mxu1  ;;  %v1217_v32 = vmul.f32 %v1201_v18, %v4190_v31  ;;  %3028 = vmatpush3.bf16.msra.mxu1 %v3279_v14 }
 0x5f1   :  { %v1237_v34 = vpack.c.bf16 %v1225_v28, %v1224_v10  ;;  %v1223_v41 = vadd.f32 %v1207_v1, %v1155_v45  ;;  %v3280_v28 = vld [vmem:[#allocation13 + $0x48] sm:$0xff]   ;;  %v2495_v1 = vld [vmem:[%s4131_s6 + $0x1] ss:$0 sm:$0xff] }
 0x5f2   :  { %v2979_v15 = vpop.f32.mrf.mxu1  ;;  %3029 = vmatprep.subr.bf16.mxu1 %v3280_v28 }
 0x5f3   :  { %v1236_v39 = vpack.c.bf16 %v1223_v41, %v1222_v23  ;;  %v1228_v22 = vadd.f32 %v2979_v15, %v1212_v17 }
 0x5f4   :  { %v1168_v47 = vpop.f32.mrf.mxu1  ;;  %3030 = vmatpush3.bf16.msra.mxu1 %v3280_v28 }
 0x5f5   :  { %3005 = vmatprep.mubr.bf16.mxu0 %v1236_v39  ;;  %v1226_v13 = vadd.f32 %v1210_v2, %v1168_v47  ;;  %3031 = vmatprep.subr.bf16.mxu1 %v3281_v42 }
 0x5f6   :  { %v2980_v46 = vpop.f32.mrf.mxu1  ;;  %3006 = vmatmul.mubr.bf16.gmra.mxu0 %v1237_v34 }
 0x5f7   :  { %v1229_v0 = vadd.f32 %v2980_v46, %v1213_v19 }
 0x5f8   :  { %v1171_v63 = vpop.f32.mrf.mxu1  ;;  %3032 = vmatpush3.bf16.msra.mxu1 %v3281_v42 }
 0x5f9   :  { %v1239_v8 = vpack.c.bf16 %v1229_v0, %v1228_v22  ;;  %v1227_v12 = vadd.f32 %v1211_v36, %v1171_v63 }
 0x5fa   :  { %v2983_v35 = vpop.f32.mrf.mxu1 }
 0x5fb   :  { %v1238_v52 = vpack.c.bf16 %v1227_v12, %v1226_v13  ;;  %v1232_v56 = vadd.f32 %v2983_v35, %v1216_v40 }
 0x5fc   :  { %v1184_v49 = vpop.f32.mrf.mxu1 }
 0x5fd   :  { %3009 = vmatprep.mubr.bf16.mxu0 %v1238_v52  ;;  %v1230_v57 = vadd.f32 %v1214_v4, %v1184_v49 }
 0x5fe   :  { %v2984_v21 = vpop.f32.mrf.mxu1  ;;  %3010 = vmatmul.mubr.bf16.gmra.mxu0 %v1239_v8 }
 0x5ff   :  { %v1233_v16 = vadd.f32 %v2984_v21, %v1217_v32 }
 0x600   :  { %v1187_v29 = vpop.f32.mrf.mxu1 }
 0x601   :  { %v1241_v10 = vpack.c.bf16 %v1233_v16, %v1232_v56  ;;  %v1231_v5 = vadd.f32 %v1215_v25, %v1187_v29 }
 0x603   :  { %v1240_v37 = vpack.c.bf16 %v1231_v5, %v1230_v57 }
 0x605   :  { %3013 = vmatprep.mubr.bf16.mxu0 %v1240_v37 }
 0x606   :  { %3014 = vmatmul.mubr.bf16.gmra.mxu0 %v1241_v10 }
 0x607   :  { %3065 = vmatprep.mubr.bf16.mxu0 %v3306_v27 }
 0x6ae   :  { %v3003_v30 = vpop.f32.mrf.mxu0 }
 0x6af   :  { %v1358_v41 = vadd.f32 %v3003_v30, %v2495_v1 }
 0x6b0   :  { %v1349_v18 = vpop.f32.mrf.mxu0 }
 0x6b1   :  { %v1350_v23 = vadd.f32 %v2495_v1, %v1349_v18  ;;  %v1414_v19 = vmax.f32 %v1358_v41, 0.0 }
 0x6b2   :  { %v3004_v45 = vpop.f32.mrf.mxu0 }
 0x6b3   :  { %v1361_v34 = vadd.f32 %v3004_v45, %v2495_v1  ;;  %v1412_v17 = vmax.f32 %v1350_v23, 0.0 }
 0x6b4   :  { %v1352_v15 = vpop.f32.mrf.mxu0 }
 0x6b5   :  { %v1353_v39 = vadd.f32 %v2495_v1, %v1352_v15  ;;  %v1415_v47 = vmax.f32 %v1361_v34, 0.0 }
 0x6b6   :  { %v3007_v7 = vpop.f32.mrf.mxu0 }
 0x6b7   :  { %v1413_v26 = vmax.f32 %v1353_v39, 0.0  ;;  %v1429_v20 = vpack.c.bf16 %v1415_v47, %v1414_v19  ;;  %v1374_v36 = vadd.f32 %v3007_v7, %v2495_v1  ;;  %v3307_v47 = vld [vmem:[#allocation10] sm:$0xff]  }
 0x6b8   :  { %v1365_v46 = vpop.f32.mrf.mxu0 }
 0x6b9   :  { %v1428_v22 = vpack.c.bf16 %v1413_v26, %v1412_v17  ;;  %v1366_v0 = vadd.f32 %v2495_v1, %v1365_v46  ;;  %v1418_v49 = vmax.f32 %v1374_v36, 0.0 }
 0x6ba   :  { %v3008_v2 = vpop.f32.mrf.mxu0 }
 0x6bb   :  { %v1377_v43 = vadd.f32 %v3008_v2, %v2495_v1  ;;  %3033 = vmatprep.mubr.bf16.mxu1 %v1428_v22  ;;  %v1416_v35 = vmax.f32 %v1366_v0, 0.0 }
 0x6bc   :  { %v1368_v63 = vpop.f32.mrf.mxu0  ;;  %3034 = vmatmul.mubr.bf16.vlgmr.msra.gmra.mxu1 %v1429_v20 }
 0x6bd   :  { %v1369_v13 = vadd.f32 %v2495_v1, %v1368_v63  ;;  %v1419_v8 = vmax.f32 %v1377_v43, 0.0 }
 0x6be   :  { %v3011_v12 = vpop.f32.mrf.mxu0 }
 0x6bf   :  { %v1417_v52 = vmax.f32 %v1369_v13, 0.0  ;;  %v1431_v31 = vpack.c.bf16 %v1419_v8, %v1418_v49  ;;  %v1390_v61 = vadd.f32 %v3011_v12, %v2495_v1  ;;  %v2505_v13 = vld [vmem:[%s4133_s8 + $0x1] ss:$0 sm:$0xff] }
 0x6c0   :  { %v1381_v11 = vpop.f32.mrf.mxu0 }
 0x6c1   :  { %v1430_v40 = vpack.c.bf16 %v1417_v52, %v1416_v35  ;;  %v1382_v21 = vadd.f32 %v2495_v1, %v1381_v11  ;;  %v1422_v57 = vmax.f32 %v1390_v61, 0.0 }
 0x6c2   :  { %v3012_v32 = vpop.f32.mrf.mxu0 }
 0x6c3   :  { %v1393_v56 = vadd.f32 %v3012_v32, %v2495_v1  ;;  %3037 = vmatprep.mubr.bf16.mxu1 %v1430_v40  ;;  %v1420_v25 = vmax.f32 %v1382_v21, 0.0 }
 0x6c4   :  { %v1384_v4 = vpop.f32.mrf.mxu0  ;;  %3038 = vmatmul.mubr.bf16.gmra.mxu1 %v1431_v31 }
 0x6c5   :  { %v1385_v16 = vadd.f32 %v2495_v1, %v1384_v4  ;;  %v1423_v6 = vmax.f32 %v1393_v56, 0.0 }
 0x6c6   :  { %v3015_v38 = vpop.f32.mrf.mxu0 }
 0x6c7   :  { %v1421_v29 = vmax.f32 %v1385_v16, 0.0  ;;  %v1433_v37 = vpack.c.bf16 %v1423_v6, %v1422_v57  ;;  %v1406_v42 = vadd.f32 %v3015_v38, %v2495_v1 }
 0x6c8   :  { %v1397_v10 = vpop.f32.mrf.mxu0 }
 0x6c9   :  { %v1432_v5 = vpack.c.bf16 %v1421_v29, %v1420_v25  ;;  %v1398_v14 = vadd.f32 %v2495_v1, %v1397_v10  ;;  %v1426_v41 = vmax.f32 %v1406_v42, 0.0 }
 0x6ca   :  { %v3016_v27 = vpop.f32.mrf.mxu0 }
 0x6cb   :  { %v1409_v28 = vadd.f32 %v3016_v27, %v2495_v1  ;;  %3041 = vmatprep.mubr.bf16.mxu1 %v1432_v5  ;;  %v1424_v23 = vmax.f32 %v1398_v14, 0.0 }
 0x6cc   :  { %v1400_v30 = vpop.f32.mrf.mxu0  ;;  %3042 = vmatmul.mubr.bf16.gmra.mxu1 %v1433_v37 }
 0x6cd   :  { %v1401_v18 = vadd.f32 %v2495_v1, %v1400_v30  ;;  %v1427_v45 = vmax.f32 %v1409_v28, 0.0 }
 0x6cf   :  { %v1425_v34 = vmax.f32 %v1401_v18, 0.0  ;;  %v1435_v39 = vpack.c.bf16 %v1427_v45, %v1426_v41 }
 0x6d1   :  { %v1434_v15 = vpack.c.bf16 %v1425_v34, %v1424_v23 }
 0x6d3   :  { %3045 = vmatprep.mubr.bf16.mxu1 %v1434_v15 }
 0x6d4   :  { %3046 = vmatmul.mubr.bf16.gmra.mxu1 %v1435_v39 }
 0x6d5   :  { %3097 = vmatprep.mubr.bf16.mxu1 %v3307_v47 }
 0x77c   :  { %v3035_v7 = vpop.f32.mrf.mxu1 }
 0x77d   :  { %v4018_v15 = vadd.f32 %v3035_v7, %v2505_v13 }
 0x77e   :  { %v1543_v17 = vpop.f32.mrf.mxu1 }
 0x780   :  { %v3036_v26 = vpop.f32.mrf.mxu1 }
 0x781   :  { %v4011_v23 = vadd.f32 %v3036_v26, %v2505_v13 }
 0x782   :  { %v1546_v19 = vpop.f32.mrf.mxu1 }
 0x783   :  { %v1609_v47 = vmax.f32 %v4011_v23, 0.0 }
 0x784   :  { %v3039_v46 = vpop.f32.mrf.mxu1 }
 0x785   :  { %v3998_v27 = vadd.f32 %v3039_v46, %v2505_v13  ;;  %v4022_v46 = vadd.f32 %v2505_v13, %v1546_v19 }
 0x786   :  { %v1559_v22 = vpop.f32.mrf.mxu1 }
 0x787   :  { %v4170_v18 = vmax.f32 %v3998_v27, 0.0  ;;  %v4009_v45 = vadd.f32 %v2505_v13, %v1559_v22  ;;  %v1608_v22 = vmax.f32 %v4018_v15, 0.0 }
 0x788   :  { %v3040_v20 = vpop.f32.mrf.mxu1 }
 0x789   :  { %v3991_v10 = vadd.f32 %v3040_v20, %v2505_v13  ;;  %v4168_v39 = vmax.f32 %v4009_v45, 0.0  ;;  %v4029_v20 = vadd.f32 %v2505_v13, %v1543_v17  ;;  %v1623_v7 = vpack.c.bf16 %v1609_v47, %v1608_v22  ;;  %v3308_v17 = vld [vmem:[#allocation9 + $0x8] sm:$0xff]  }
 0x78a   :  { %v1562_v2 = vpop.f32.mrf.mxu1 }
 0x78b   :  { %v4169_v28 = vmax.f32 %v3991_v10, 0.0  ;;  %v4002_v42 = vadd.f32 %v2505_v13, %v1562_v2  ;;  %v1607_v2 = vmax.f32 %v4022_v46, 0.0  ;;  %v1606_v19 = vmax.f32 %v4029_v20, 0.0 }
 0x78c   :  { %v3043_v0 = vpop.f32.mrf.mxu1  ;;  %v4197_v46 = vmax.f32 %v4009_v45, 0.0 }
 0x78d   :  { %v3973_v56 = vadd.f32 %v3043_v0, %v2505_v13  ;;  %v1625_v34 = vpack.c.bf16 %v4169_v28, %v4170_v18  ;;  %v4167_v41 = vmax.f32 %v4002_v42, 0.0  ;;  %v1622_v0 = vpack.c.bf16 %v1607_v2, %v1606_v19 }
 0x78e   :  { %v1575_v1 = vpop.f32.mrf.mxu1 }
 0x78f   :  { %v4166_v29 = vmax.f32 %v3973_v56, 0.0  ;;  %v3989_v57 = vadd.f32 %v2505_v13, %v1575_v1  ;;  %v1624_v26 = vpack.c.bf16 %v4167_v41, %v4168_v39  ;;  %v3309_v1 = vld [vmem:[#allocation9 + $0x10] sm:$0xff]  }
 0x790   :  { %v3044_v43 = vpop.f32.mrf.mxu1 }
 0x791   :  { %v3967_v40 = vadd.f32 %v3044_v43, %v2505_v13  ;;  %v4164_v14 = vmax.f32 %v3989_v57, 0.0  ;;  %v3310_v43 = vld [vmem:[#allocation9 + $0x18] sm:$0xff]  }
 0x792   :  { %v1578_v36 = vpop.f32.mrf.mxu1 }
 0x793   :  { %v4165_v6 = vmax.f32 %v3967_v40, 0.0  ;;  %v3982_v38 = vadd.f32 %v2505_v13, %v1578_v36  ;;  %v3311_v36 = vld [vmem:[#allocation9 + $0x20] sm:$0xff]  }
 0x794   :  { %v3047_v63 = vpop.f32.mrf.mxu1 }
 0x795   :  { %v3961_v12 = vadd.f32 %v3047_v63, %v2505_v13  ;;  %v1627_v5 = vpack.c.bf16 %v4165_v6, %v4166_v29  ;;  %v4163_v37 = vmax.f32 %v3982_v38, 0.0  ;;  %v3312_v63 = vld [vmem:[#allocation9 + $0x28] sm:$0xff]  }
 0x796   :  { %v1591_v8 = vpop.f32.mrf.mxu1 }
 0x797   :  { %v3963_v52 = vadd.f32 %v2505_v13, %v1591_v8  ;;  %v4162_v31 = vmax.f32 %v3961_v12, 0.0  ;;  %v1626_v30 = vpack.c.bf16 %v4163_v37, %v4164_v14  ;;  %v3314_v8 = vld [vmem:[#allocation9 + $0x38] sm:$0xff]  }
 0x798   :  { %v3048_v35 = vpop.f32.mrf.mxu1 }
 0x799   :  { %v3965_v49 = vadd.f32 %v3048_v35, %v2505_v13  ;;  %v4160_v61 = vmax.f32 %v3963_v52, 0.0  ;;  %v3282_v35 = vld [vmem:[#allocation12 + $0xb8] sm:$0xff]  }
 0x79a   :  { %v1594_v11 = vpop.f32.mrf.mxu1 }
 0x79b   :  { %v4161_v32 = vmax.f32 %v3965_v49, 0.0  ;;  %v3971_v21 = vadd.f32 %v2505_v13, %v1594_v11  ;;  %v3313_v13 = vld [vmem:[#allocation9 + $0x30] sm:$0xff]  }
 0x79c   :  { %v3283_v11 = vld [vmem:[#allocation12 + $0xb0] sm:$0xff]  }
 0x79d   :  { %v1629_v4 = vpack.c.bf16 %v4161_v32, %v4162_v31  ;;  %v4159_v16 = vmax.f32 %v3971_v21, 0.0 }
 0x79f   :  { %v1628_v25 = vpack.c.bf16 %v4159_v16, %v4160_v61  ;;  %3049 = vmatprep.subr.bf16.mxu0 %v1629_v4 }
 0x7a0   :  { %3050 = vmatpush3.bf16.msra.mxu0 %v1629_v4  ;;  %v3284_v4 = vld [vmem:[#allocation12 + $0xa8] sm:$0xff]  }
 0x7a1   :  { %3051 = vmatprep.subr.bf16.mxu0 %v1628_v25 }
 0x7a4   :  { %3052 = vmatpush3.bf16.msra.mxu0 %v1628_v25  ;;  %v3285_v25 = vld [vmem:[#allocation12 + $0xa0] sm:$0xff]  }
 0x7a5   :  { %3053 = vmatprep.subr.bf16.mxu0 %v1627_v5 }
 0x7a8   :  { %3054 = vmatpush3.bf16.msra.mxu0 %v1627_v5  ;;  %v3286_v5 = vld [vmem:[#allocation12 + $0x98] sm:$0xff]  }
 0x7a9   :  { %3055 = vmatprep.subr.bf16.mxu0 %v1626_v30 }
 0x7ac   :  { %3056 = vmatpush3.bf16.msra.mxu0 %v1626_v30 }
 0x7ad   :  { %3057 = vmatprep.subr.bf16.mxu0 %v1625_v34 }
 0x7b0   :  { %3058 = vmatpush3.bf16.msra.mxu0 %v1625_v34 }
 0x7b1   :  { %3059 = vmatprep.subr.bf16.mxu0 %v1624_v26 }
 0x7b4   :  { %3060 = vmatpush3.bf16.msra.mxu0 %v1624_v26 }
 0x7b5   :  { %3061 = vmatprep.subr.bf16.mxu0 %v1623_v7 }
 0x7b8   :  { %3062 = vmatpush3.bf16.msra.mxu0 %v1623_v7 }
 0x7b9   :  { %3063 = vmatprep.subr.bf16.mxu0 %v1622_v0 }
 0x7bc   :  { %3064 = vmatpush3.bf16.msra.mxu0 %v1622_v0 }
 0x7bd   :  { %3113 = vmatprep.subr.bf16.mxu0 %v3282_v35 }
 0x7bf   :  { %3066 = vmatmul.mubr.bf16.vlgmr.msra.gmra.mxu0 %v3308_v17 }
 0x7c0   :  { %3069 = vmatprep.mubr.bf16.mxu0 %v3309_v1  ;;  %3114 = vmatpush3.bf16.msra.mxu0 %v3282_v35 }
 0x7c1   :  { %3115 = vmatprep.subr.bf16.mxu0 %v3283_v11 }
 0x7c4   :  { %3116 = vmatpush3.bf16.msra.mxu0 %v3283_v11 }
 0x7c5   :  { %3117 = vmatprep.subr.bf16.mxu0 %v3284_v4 }
 0x7c7   :  { %3070 = vmatmul.mubr.bf16.gmra.mxu0 %v3310_v43 }
 0x7c8   :  { %3073 = vmatprep.mubr.bf16.mxu0 %v3311_v36  ;;  %3118 = vmatpush3.bf16.msra.mxu0 %v3284_v4  ;;  %v4194_v4 = vld [vmem:[#allocation23_spill] sm:$0xff] }
 0x7c9   :  { %3119 = vmatprep.subr.bf16.mxu0 %v3285_v25 }
 0x7cc   :  { %3120 = vmatpush3.bf16.msra.mxu0 %v3285_v25 }
 0x7cd   :  { %3121 = vmatprep.subr.bf16.mxu0 %v3286_v5 }
 0x7cf   :  { %3074 = vmatmul.mubr.bf16.gmra.mxu0 %v3312_v63 }
 0x7d0   :  { %3077 = vmatprep.mubr.bf16.mxu0 %v3313_v13  ;;  %3122 = vmatpush3.bf16.msra.mxu0 %v3286_v5 }
 0x7d7   :  { %3078 = vmatmul.mubr.bf16.gmra.mxu0 %v3314_v8 }
 0x87f   :  { %v3067_v30 = vpop.f32.mrf.mxu0 }
 0x881   :  { %v1664_v34 = vpop.f32.mrf.mxu0 }
 0x883   :  { %v3068_v26 = vpop.f32.mrf.mxu0 }
 0x885   :  { %v1667_v7 = vpop.f32.mrf.mxu0 }
 0x887   :  { %v3071_v0 = vpop.f32.mrf.mxu0 }
 0x889   :  { %v1680_v17 = vpop.f32.mrf.mxu0 }
 0x88b   :  { %v3072_v1 = vpop.f32.mrf.mxu0 }
 0x88d   :  { %v1683_v43 = vpop.f32.mrf.mxu0 }
 0x88f   :  { %v3075_v36 = vpop.f32.mrf.mxu0 }
 0x890   :  { %v1705_v29 = vadd.f32 %v3075_v36, %v3726_v62  ;;  %v3289_v36 = vld [vmem:[#allocation12 + $0x80] sm:$0xff]  }
 0x891   :  { %v1696_v63 = vpop.f32.mrf.mxu0 }
 0x893   :  { %v3076_v13 = vpop.f32.mrf.mxu0 }
 0x894   :  { %v1708_v31 = vadd.f32 %v3076_v13, %v3721_v58  ;;  %v1692_v58 = vadd.f32 %v3072_v1, %v3737_v51  ;;  %v3287_v1 = vld [vmem:[#allocation12 + $0x90] sm:$0xff]  }
 0x895   :  { %v1699_v8 = vpop.f32.mrf.mxu0  ;;  %3123 = vmatprep.subr.bf16.mxu0 %v3287_v1  ;;  %v3291_v13 = vld [vmem:[#allocation13 + $0xb0] sm:$0xff]  }
 0x896   :  { %v1738_v18 = vmax.f32 %v1708_v31, 0.0  ;;  %v1684_v31 = vadd.f32 %v3744_v3, %v1683_v43  ;;  %3124 = vmatpush3.bf16.msra.mxu0 %v3287_v1  ;;  %v3288_v43 = vld [vmem:[#allocation12 + $0x88] sm:$0xff]  }
 0x897   :  { %v3079_v35 = vpop.f32.mrf.mxu0  ;;  %3125 = vmatprep.subr.bf16.mxu0 %v3288_v43 }
 0x898   :  { %v1721_v16 = vadd.f32 %v3079_v35, %v4194_v4  ;;  %v1700_v35 = vadd.f32 %v3730_v9, %v1699_v8  ;;  %v1732_v51 = vmax.f32 %v1684_v31, 0.0  ;;  %v3292_v8 = vld [vmem:[#allocation13 + $0xa8] sm:$0xff]  }
 0x899   :  { %v1712_v11 = vpop.f32.mrf.mxu0 }
 0x89a   :  { %v1713_v25 = vadd.f32 %v3717_v54, %v1712_v11  ;;  %v1741_v37 = vmax.f32 %v1721_v16, 0.0  ;;  %v1737_v54 = vmax.f32 %v1705_v29, 0.0  ;;  %v1736_v16 = vmax.f32 %v1700_v35, 0.0  ;;  %3126 = vmatpush3.bf16.msra.mxu0 %v3288_v43  ;;  %v3293_v11 = vld [vmem:[#allocation13 + $0xa0] sm:$0xff]  }
 0x89b   :  { %v3080_v61 = vpop.f32.mrf.mxu0  ;;  %v1681_v29 = vadd.f32 %v3747_v50, %v1680_v17  ;;  %v3319_v17 = vld [vmem:[#allocation10 + $0x28] sm:$0xff]   ;;  %3127 = vmatprep.subr.bf16.mxu0 %v3289_v36  ;;  %v1850_v35 = vstv %s1849_s19 }
 0x89c   :  { %v1724_v5 = vadd.f32 %v3080_v61, %v3719_v55  ;;  %v1739_v41 = vmax.f32 %v1713_v25, 0.0  ;;  %v1697_v55 = vadd.f32 %v3734_v33, %v1696_v63  ;;  %v1748_v61 = vpack.c.bf16 %v1738_v18, %v1737_v54  ;;  %v3290_v63 = vld [vmem:[#allocation13 + $0xb8] sm:$0xff]  }
 0x89d   :  { %v1715_v32 = vpop.f32.mrf.mxu0  ;;  %v1676_v33 = vadd.f32 %v3068_v26, %v3749_v24  ;;  %v1668_v18 = vadd.f32 %v3758_v53, %v1667_v7  ;;  %v3317_v53 = vld [vmem:[#allocation10 + $0x18] sm:$0xff]   ;;  %v3318_v7 = vld [vmem:[#allocation10 + $0x20] sm:$0xff]   ;;  %v1853_v54 = vmul.f32 %v1850_v35, %v1608_v22  ;;  %v4195_v22 = vmax.f32 %v3998_v27, 0.0 }
 0x89e   :  { %v1742_v14 = vmax.f32 %v1724_v5, 0.0  ;;  %v1716_v6 = vadd.f32 %v3724_v60, %v1715_v32  ;;  %v1689_v60 = vadd.f32 %v3071_v0, %v3740_v48  ;;  %v1735_v62 = vmax.f32 %v1697_v55, 0.0  ;;  %3128 = vmatpush3.bf16.msra.mxu0 %v3289_v36  ;;  %v3294_v25 = vld [vmem:[#allocation13 + $0x98] sm:$0xff]  }
 0x89f   :  { %v1734_v32 = vmax.f32 %v1692_v58, 0.0  ;;  %v1730_v48 = vmax.f32 %v1676_v33, 0.0  ;;  %v1728_v0 = vmax.f32 %v1668_v18, 0.0  ;;  %v1854_v55 = vmul.f32 %v1850_v35, %v1609_v47 }
 0x8a0   :  { %v1750_v39 = vpack.c.bf16 %v1742_v14, %v1741_v37  ;;  %v1740_v28 = vmax.f32 %v1716_v6, 0.0  ;;  %v1747_v9 = vpack.c.bf16 %v1736_v16, %v1735_v62  ;;  %v1733_v6 = vmax.f32 %v1689_v60, 0.0 }
 0x8a1   :  { %v1673_v14 = vadd.f32 %v3067_v30, %v3752_v44  ;;  %v3315_v44 = vld [vmem:[#allocation10 + $0x8] sm:$0xff]   ;;  %v3316_v30 = vld [vmem:[#allocation10 + $0x10] sm:$0xff]   ;;  %v1851_v16 = vmul.f32 %v1850_v35, %v1606_v19  ;;  %v1852_v62 = vmul.f32 %v1850_v35, %v1607_v2  ;;  %v1857_v23 = vmul.f32 %v1850_v35, %v4195_v22 }
 0x8a2   :  { %v1749_v4 = vpack.c.bf16 %v1740_v28, %v1739_v41  ;;  %3081 = vmatprep.subr.bf16.mxu1 %v1750_v39  ;;  %v1746_v37 = vpack.c.bf16 %v1734_v32, %v1733_v6  ;;  %v1731_v28 = vmax.f32 %v1681_v29, 0.0  ;;  %v4196_v47 = vmax.f32 %v3991_v10, 0.0 }
 0x8a3   :  { %3082 = vmatpush3.bf16.msra.mxu1 %v1750_v39  ;;  %v1729_v3 = vmax.f32 %v1673_v14, 0.0  ;;  %v1665_v39 = vadd.f32 %v3762_v59, %v1664_v34  ;;  %v3320_v59 = vld [vmem:[#allocation10 + $0x30] sm:$0xff]   ;;  %v3321_v34 = vld [vmem:[#allocation10 + $0x38] sm:$0xff]   ;;  %v1855_v2 = vmul.f32 %v1850_v35, %v4197_v46  ;;  %v4198_v14 = vmax.f32 %v4002_v42, 0.0 }
 0x8a4   :  { %3083 = vmatprep.subr.bf16.mxu1 %v1749_v4  ;;  %v1745_v41 = vpack.c.bf16 %v1732_v51, %v1731_v28  ;;  %v4199_v10 = vmax.f32 %v3973_v56, 0.0  ;;  %v4201_v42 = vmax.f32 %v3989_v57, 0.0 }
 0x8a5   :  { %v1744_v50 = vpack.c.bf16 %v1730_v48, %v1729_v3  ;;  %v1727_v24 = vmax.f32 %v1665_v39, 0.0  ;;  %v1856_v28 = vmul.f32 %v1850_v35, %v4198_v14 }
 0x8a7   :  { %3084 = vmatpush3.bf16.msra.mxu1 %v1749_v4  ;;  %v1743_v26 = vpack.c.bf16 %v1728_v0, %v1727_v24  ;;  %v1861_v0 = vmul.f32 %v1850_v35, %v4199_v10  ;;  %v4200_v24 = vmax.f32 %v3967_v40, 0.0  ;;  %v4203_v40 = vmax.f32 %v3961_v12, 0.0 }
 0x8a8   :  { %3085 = vmatprep.subr.bf16.mxu1 %v1748_v61 }
 0x8ab   :  { %3086 = vmatpush3.bf16.msra.mxu1 %v1748_v61 }
 0x8ac   :  { %3087 = vmatprep.subr.bf16.mxu1 %v1747_v9 }
 0x8af   :  { %3088 = vmatpush3.bf16.msra.mxu1 %v1747_v9 }
 0x8b0   :  { %3089 = vmatprep.subr.bf16.mxu1 %v1746_v37 }
 0x8b3   :  { %3090 = vmatpush3.bf16.msra.mxu1 %v1746_v37  ;;  %v1858_v37 = vmul.f32 %v1850_v35, %v4196_v47 }
 0x8b4   :  { %3091 = vmatprep.subr.bf16.mxu1 %v1745_v41 }
 0x8b7   :  { %3092 = vmatpush3.bf16.msra.mxu1 %v1745_v41 }
 0x8b8   :  { %3093 = vmatprep.subr.bf16.mxu1 %v1744_v50 }
 0x8bb   :  { %3094 = vmatpush3.bf16.msra.mxu1 %v1744_v50 }
 0x8bc   :  { %3095 = vmatprep.subr.bf16.mxu1 %v1743_v26 }
 0x8bf   :  { %3096 = vmatpush3.bf16.msra.mxu1 %v1743_v26  ;;  %v1862_v26 = vmul.f32 %v1850_v35, %v4200_v24 }
 0x8c0   :  { %3145 = vmatprep.subr.bf16.mxu1 %v3290_v63 }
 0x8c2   :  { %3098 = vmatmul.mubr.bf16.vlgmr.msra.gmra.mxu1 %v3315_v44 }
 0x8c3   :  { %3101 = vmatprep.mubr.bf16.mxu1 %v3316_v30  ;;  %3146 = vmatpush3.bf16.msra.mxu1 %v3290_v63  ;;  %v1859_v30 = vmul.f32 %v1850_v35, %v4201_v42 }
 0x8c4   :  { %3147 = vmatprep.subr.bf16.mxu1 %v3291_v13 }
 0x8c7   :  { %3148 = vmatpush3.bf16.msra.mxu1 %v3291_v13  ;;  %v1865_v13 = vmul.f32 %v1850_v35, %v4203_v40 }
 0x8c8   :  { %3149 = vmatprep.subr.bf16.mxu1 %v3292_v8 }
 0x8ca   :  { %3102 = vmatmul.mubr.bf16.gmra.mxu1 %v3317_v53 }
 0x8cb   :  { %3105 = vmatprep.mubr.bf16.mxu1 %v3318_v7  ;;  %3150 = vmatpush3.bf16.msra.mxu1 %v3292_v8  ;;  %v4202_v7 = vmax.f32 %v3982_v38, 0.0  ;;  %v4204_v8 = vmax.f32 %v3965_v49, 0.0  ;;  %v4205_v38 = vmax.f32 %v3963_v52, 0.0  ;;  %v3296_v49 = vld [vmem:[#allocation13 + $0x88] sm:$0xff]  }
 0x8cc   :  { %3151 = vmatprep.subr.bf16.mxu1 %v3293_v11 }
 0x8cf   :  { %3152 = vmatpush3.bf16.msra.mxu1 %v3293_v11  ;;  %v1866_v11 = vmul.f32 %v1850_v35, %v4204_v8 }
 0x8d0   :  { %3153 = vmatprep.subr.bf16.mxu1 %v3294_v25 }
 0x8d2   :  { %3106 = vmatmul.mubr.bf16.gmra.mxu1 %v3319_v17  ;;  %v1860_v17 = vmul.f32 %v1850_v35, %v4202_v7 }
 0x8d3   :  { %3109 = vmatprep.mubr.bf16.mxu1 %v3320_v59  ;;  %3154 = vmatpush3.bf16.msra.mxu1 %v3294_v25 }
 0x8da   :  { %3110 = vmatmul.mubr.bf16.gmra.mxu1 %v3321_v34 }
 0x982   :  { %v3099_v5 = vpop.f32.mrf.mxu1 }
 0x983   :  { %v1869_v61 = vadd.f32 %v3099_v5, %v1853_v54  ;;  %v1863_v5 = vmul.f32 %v1850_v35, %v4205_v38  ;;  %v4206_v54 = vmax.f32 %v3971_v21, 0.0  ;;  %v2516_v21 = vld [vmem:[%s4131_s6 + $0x2] ss:$0 sm:$0xff] }
 0x984   :  { %v1785_v4 = vpop.f32.mrf.mxu1 }
 0x985   :  { %v1867_v31 = vadd.f32 %v1851_v16, %v1785_v4 }
 0x986   :  { %v3100_v58 = vpop.f32.mrf.mxu1 }
 0x987   :  { %v1870_v60 = vadd.f32 %v3100_v58, %v1854_v55  ;;  %v1864_v55 = vmul.f32 %v1850_v35, %v4206_v54 }
 0x988   :  { %v1788_v32 = vpop.f32.mrf.mxu1 }
 0x989   :  { %v1884_v9 = vpack.c.bf16 %v1870_v60, %v1869_v61  ;;  %v1868_v6 = vadd.f32 %v1852_v62, %v1788_v32  ;;  %v3295_v62 = vld [vmem:[#allocation13 + $0x90] sm:$0xff]   ;;  %v3297_v32 = vld [vmem:[#allocation13 + $0x80] sm:$0xff]  }
 0x98a   :  { %v3103_v29 = vpop.f32.mrf.mxu1  ;;  %3155 = vmatprep.subr.bf16.mxu1 %v3295_v62 }
 0x98b   :  { %v1883_v33 = vpack.c.bf16 %v1868_v6, %v1867_v31  ;;  %v1873_v19 = vadd.f32 %v3103_v29, %v1857_v23  ;;  %3156 = vmatpush3.bf16.msra.mxu1 %v3295_v62  ;;  %v3299_v62 = vld [vmem:[#allocation15 + $0x30] sm:$0xff]  }
 0x98c   :  { %v1801_v15 = vpop.f32.mrf.mxu1  ;;  %3157 = vmatprep.subr.bf16.mxu1 %v3296_v49 }
 0x98d   :  { %3129 = vmatprep.mubr.bf16.mxu0 %v1883_v33  ;;  %v1871_v18 = vadd.f32 %v1855_v2, %v1801_v15 }
 0x98e   :  { %v3104_v20 = vpop.f32.mrf.mxu1  ;;  %3130 = vmatmul.mubr.bf16.vlgmr.msra.gmra.mxu0 %v1884_v9 }
 0x98f   :  { %v1874_v51 = vadd.f32 %v3104_v20, %v1858_v37  ;;  %3158 = vmatpush3.bf16.msra.mxu1 %v3296_v49  ;;  %v3300_v49 = vld [vmem:[#allocation15 + $0x28] sm:$0xff]  }
 0x990   :  { %v1804_v48 = vpop.f32.mrf.mxu1  ;;  %3159 = vmatprep.subr.bf16.mxu1 %v3297_v32 }
 0x991   :  { %v1886_v41 = vpack.c.bf16 %v1874_v51, %v1873_v19  ;;  %v1872_v3 = vadd.f32 %v1856_v28, %v1804_v48 }
 0x992   :  { %v3107_v27 = vpop.f32.mrf.mxu1 }
 0x993   :  { %v1885_v39 = vpack.c.bf16 %v1872_v3, %v1871_v18  ;;  %v1877_v44 = vadd.f32 %v3107_v27, %v1861_v0  ;;  %3160 = vmatpush3.bf16.msra.mxu1 %v3297_v32  ;;  %v3301_v32 = vld [vmem:[#allocation15 + $0x20] sm:$0xff]  }
 0x994   :  { %v1817_v50 = vpop.f32.mrf.mxu1 }
 0x995   :  { %3133 = vmatprep.mubr.bf16.mxu0 %v1885_v39  ;;  %v1875_v34 = vadd.f32 %v1859_v30, %v1817_v50 }
 0x996   :  { %v3108_v45 = vpop.f32.mrf.mxu1  ;;  %3134 = vmatmul.mubr.bf16.gmra.mxu0 %v1886_v41 }
 0x997   :  { %v1878_v53 = vadd.f32 %v3108_v45, %v1862_v26 }
 0x998   :  { %v1820_v59 = vpop.f32.mrf.mxu1 }
 0x999   :  { %v1888_v1 = vpack.c.bf16 %v1878_v53, %v1877_v44  ;;  %v1876_v43 = vadd.f32 %v1860_v17, %v1820_v59 }
 0x99a   :  { %v3111_v56 = vpop.f32.mrf.mxu1 }
 0x99b   :  { %v1887_v36 = vpack.c.bf16 %v1876_v43, %v1875_v34  ;;  %v1881_v25 = vadd.f32 %v3111_v56, %v1865_v13 }
 0x99c   :  { %v1833_v63 = vpop.f32.mrf.mxu1 }
 0x99d   :  { %3137 = vmatprep.mubr.bf16.mxu0 %v1887_v36  ;;  %v1879_v61 = vadd.f32 %v1863_v5, %v1833_v63 }
 0x99e   :  { %v3112_v57 = vpop.f32.mrf.mxu1  ;;  %3138 = vmatmul.mubr.bf16.gmra.mxu0 %v1888_v1 }
 0x99f   :  { %v1882_v4 = vadd.f32 %v3112_v57, %v1866_v11 }
 0x9a0   :  { %v1836_v58 = vpop.f32.mrf.mxu1 }
 0x9a1   :  { %v1890_v16 = vpack.c.bf16 %v1882_v4, %v1881_v25  ;;  %v1880_v60 = vadd.f32 %v1864_v55, %v1836_v58 }
 0x9a3   :  { %v1889_v12 = vpack.c.bf16 %v1880_v60, %v1879_v61  ;;  %v3514_v61 = vmov 0.0   ;;  %v3298_v60 = vld [vmem:[#allocation15 + $0x38] sm:$0xff]  }
 0x9a4   :  { %3177 = vmatprep.subr.bf16.mxu0 %v3514_v61  ;;  %3197 = vmatprep.subr.bf16.mxu1 %v3514_v61 }
 0x9a5   :  { %3141 = vmatprep.mubr.bf16.mxu0 %v1889_v12  ;;  %v3516_v12 = vmov 0  }
 0x9a6   :  { %3142 = vmatmul.mubr.bf16.gmra.mxu0 %v1890_v16  ;;  %v2320_v16 = vld [vmem:[%s4135_s10] sm:$0xff]  ;;  %3233 = vset.pattern.permute.xlu0 %v3516_v12 }
 0x9a7   :  { %3193 = vmatprep.mubr.msk.bf16.mxu0 %vm3515_vm0, %v3514_v61  ;;  %2323 = vperm.xlu0 %3233, %v2320_v16  }
 0xa4e   :  { %v3131_v52 = vpop.f32.mrf.mxu0 }
 0xa4f   :  { %v2007_v29 = vadd.f32 %v3131_v52, %v2516_v21  ;;  %v3302_v52 = vld [vmem:[#allocation15 + $0x18] sm:$0xff]  }
 0xa50   :  { %v1998_v31 = vpop.f32.mrf.mxu0 }
 0xa51   :  { %v1999_v9 = vadd.f32 %v2516_v21, %v1998_v31  ;;  %v2063_v20 = vmax.f32 %v2007_v29, 0.0  ;;  %v3303_v31 = vld [vmem:[#allocation15 + $0x10] sm:$0xff]  }
 0xa52   :  { %v3132_v35 = vpop.f32.mrf.mxu0 }
 0xa53   :  { %v2010_v6 = vadd.f32 %v3132_v35, %v2516_v21  ;;  %v2061_v47 = vmax.f32 %v1999_v9, 0.0 }
 0xa54   :  { %v2001_v33 = vpop.f32.mrf.mxu0 }
 0xa55   :  { %v2002_v15 = vadd.f32 %v2516_v21, %v2001_v33  ;;  %v2064_v22 = vmax.f32 %v2010_v6, 0.0 }
 0xa56   :  { %v3135_v23 = vpop.f32.mrf.mxu0 }
 0xa57   :  { %v2062_v37 = vmax.f32 %v2002_v15, 0.0  ;;  %v2078_v2 = vpack.c.bf16 %v2064_v22, %v2063_v20  ;;  %v2023_v48 = vadd.f32 %v3135_v23, %v2516_v21 }
 0xa58   :  { %v2014_v19 = vpop.f32.mrf.mxu0 }
 0xa59   :  { %v2077_v46 = vpack.c.bf16 %v2062_v37, %v2061_v47  ;;  %v2015_v14 = vadd.f32 %v2516_v21, %v2014_v19  ;;  %v2067_v10 = vmax.f32 %v2023_v48, 0.0 }
 0xa5a   :  { %v3136_v51 = vpop.f32.mrf.mxu0 }
 0xa5b   :  { %v2026_v28 = vadd.f32 %v3136_v51, %v2516_v21  ;;  %3161 = vmatprep.mubr.bf16.mxu1 %v2077_v46  ;;  %v2065_v39 = vmax.f32 %v2015_v14, 0.0 }
 0xa5c   :  { %v2017_v18 = vpop.f32.mrf.mxu0  ;;  %3162 = vmatmul.mubr.bf16.vlgmr.msra.gmra.mxu1 %v2078_v2  ;;  %v2526_v2 = vld [vmem:[%s4133_s8 + $0x2] ss:$0 sm:$0xff] }
 0xa5d   :  { %v2018_v41 = vadd.f32 %v2516_v21, %v2017_v18  ;;  %v2068_v3 = vmax.f32 %v2026_v28, 0.0  ;;  %3198 = vmatpush3.bf16.msra.mxu1 %v3298_v60 }
 0xa5e   :  { %v3139_v27 = vpop.f32.mrf.mxu0  ;;  %3199 = vmatprep.subr.bf16.mxu1 %v3514_v61 }
 0xa5f   :  { %v2066_v50 = vmax.f32 %v2018_v41, 0.0  ;;  %v2080_v26 = vpack.c.bf16 %v2068_v3, %v2067_v10  ;;  %v2039_v30 = vadd.f32 %v3139_v27, %v2516_v21 }
 0xa60   :  { %v2030_v0 = vpop.f32.mrf.mxu0 }
 0xa61   :  { %v2079_v24 = vpack.c.bf16 %v2066_v50, %v2065_v39  ;;  %v2031_v44 = vadd.f32 %v2516_v21, %v2030_v0  ;;  %v2071_v43 = vmax.f32 %v2039_v30, 0.0  ;;  %3200 = vmatpush3.bf16.msra.mxu1 %v3299_v62  ;;  %v2271_v62 = vld [vmem:[%s4134_s9] sm:$0xf]  ;;  %s3470_s9 = scalar_lea.vmem %s2447_s26, 128 }
 0xa62   :  { %v3140_v45 = vpop.f32.mrf.mxu0  ;;  %3201 = vmatprep.subr.bf16.mxu1 %v3514_v61  ;;  %p3471_p7 = scmp.ne.s32.totalorder %s2447_s26, %s3470_s9  ;;  %p3476_p9 = scmp.lt.s32.totalorder %s3470_s9, %s3470_s9 }
 0xa63   :  { %v2042_v42 = vadd.f32 %v3140_v45, %v2516_v21  ;;  %3165 = vmatprep.mubr.bf16.mxu1 %v2079_v24  ;;  %v2069_v34 = vmax.f32 %v2031_v44, 0.0 }
 0xa64   :  { %v2033_v53 = vpop.f32.mrf.mxu0  ;;  %3166 = vmatmul.mubr.bf16.gmra.mxu1 %v2080_v26  ;;  %p3477_p10 = por %p3476_p9, %p3475_p8 }
 0xa65   :  { %v2034_v7 = vadd.f32 %v2516_v21, %v2033_v53  ;;  %v2072_v17 = vmax.f32 %v2042_v42, 0.0  ;;  %3202 = vmatpush3.bf16.msra.mxu1 %v3300_v49  ;;  %v3305_v49 = vld [vmem:[#allocation15] sm:$0xff]  }
 0xa66   :  { %v3143_v59 = vpop.f32.mrf.mxu0  ;;  %3203 = vmatprep.subr.bf16.mxu1 %v3514_v61  ;;  %p3478_p11 = pnand %p3477_p10, %p3471_p7 }
 0xa67   :  { %v2070_v1 = vmax.f32 %v2034_v7, 0.0  ;;  %v2082_v63 = vpack.c.bf16 %v2072_v17, %v2071_v43  ;;  %v2055_v11 = vadd.f32 %v3143_v59, %v2516_v21 }
 0xa68   :  { %v2046_v56 = vpop.f32.mrf.mxu0 }
 0xa69   :  { %v2081_v36 = vpack.c.bf16 %v2070_v1, %v2069_v34  ;;  %v2047_v13 = vadd.f32 %v2516_v21, %v2046_v56  ;;  %v2075_v54 = vmax.f32 %v2055_v11, 0.0  ;;  %3204 = vmatpush3.bf16.msra.mxu1 %v3301_v32  ;;  %v2324_v32 = vpop.permute.xlu0 %2323 }
 0xa6a   :  { %v3144_v40 = vpop.f32.mrf.mxu0  ;;  %3205 = vmatprep.subr.bf16.mxu1 %v3514_v61 }
 0xa6b   :  { %v2058_v8 = vadd.f32 %v3144_v40, %v2516_v21  ;;  %3169 = vmatprep.mubr.bf16.mxu1 %v2081_v36  ;;  %v2073_v5 = vmax.f32 %v2047_v13, 0.0 }
 0xa6c   :  { %v2049_v57 = vpop.f32.mrf.mxu0  ;;  %3170 = vmatmul.mubr.bf16.gmra.mxu1 %v2082_v63 }
 0xa6d   :  { %v2050_v25 = vadd.f32 %v2516_v21, %v2049_v57  ;;  %v2076_v38 = vmax.f32 %v2058_v8, 0.0  ;;  %3206 = vmatpush3.bf16.msra.mxu1 %v3302_v52  ;;  %v3304_v21 = vld [vmem:[#allocation15 + $0x8] sm:$0xff]  }
 0xa6e   :  { %3207 = vmatprep.subr.bf16.mxu1 %v3514_v61 }
 0xa6f   :  { %v2074_v4 = vmax.f32 %v2050_v25, 0.0  ;;  %v2084_v58 = vpack.c.bf16 %v2076_v38, %v2075_v54 }
 0xa71   :  { %v2083_v55 = vpack.c.bf16 %v2074_v4, %v2073_v5  ;;  %3208 = vmatpush3.bf16.msra.mxu1 %v3303_v31 }
 0xa72   :  { %3209 = vmatprep.subr.bf16.mxu1 %v3514_v61 }
 0xa73   :  { %3173 = vmatprep.mubr.bf16.mxu1 %v2083_v55 }
 0xa74   :  { %3174 = vmatmul.mubr.bf16.gmra.mxu1 %v2084_v58 }
 0xa75   :  { %3213 = vmatprep.mubr.msk.bf16.mxu1 %vm3515_vm0, %v3514_v61  ;;  %3210 = vmatpush3.bf16.msra.mxu1 %v3304_v21 }
 0xa76   :  { %3211 = vmatprep.subr.bf16.mxu1 %v3514_v61 }
 0xa79   :  { %3212 = vmatpush3.bf16.msra.mxu1 %v3305_v49 }
 0xb1c   :  { %v3163_v35 = vpop.f32.mrf.mxu1 }
 0xb1d   :  { %v2201_v57 = vadd.f32 %v3163_v35, %v2526_v2 }
 0xb1e   :  { %v2192_v9 = vpop.f32.mrf.mxu1 }
 0xb1f   :  { %v2257_v54 = vmax.f32 %v2201_v57, 0.0  ;;  %v2193_v55 = vadd.f32 %v2526_v2, %v2192_v9 }
 0xb20   :  { %v3164_v6 = vpop.f32.mrf.mxu1 }
 0xb21   :  { %v2204_v13 = vadd.f32 %v3164_v6, %v2526_v2  ;;  %v2255_v60 = vmax.f32 %v2193_v55, 0.0 }
 0xb22   :  { %v2195_v29 = vpop.f32.mrf.mxu1 }
 0xb23   :  { %v2258_v38 = vmax.f32 %v2204_v13, 0.0  ;;  %v2196_v5 = vadd.f32 %v2526_v2, %v2195_v29 }
 0xb24   :  { %v3167_v33 = vpop.f32.mrf.mxu1 }
 0xb25   :  { %v2217_v34 = vadd.f32 %v3167_v33, %v2526_v2  ;;  %v2273_v58 = vpack.c.bf16 %v2258_v38, %v2257_v54  ;;  %v2256_v16 = vmax.f32 %v2196_v5, 0.0 }
 0xb26   :  { %v2208_v15 = vpop.f32.mrf.mxu1 }
 0xb27   :  { %v2261_v63 = vmax.f32 %v2217_v34, 0.0  ;;  %v2209_v40 = vadd.f32 %v2526_v2, %v2208_v15  ;;  %v2272_v12 = vpack.c.bf16 %v2256_v16, %v2255_v60 }
 0xb28   :  { %v3168_v22 = vpop.f32.mrf.mxu1 }
 0xb29   :  { %v2220_v7 = vadd.f32 %v3168_v22, %v2526_v2  ;;  %v2259_v25 = vmax.f32 %v2209_v40, 0.0 }
 0xb2a   :  { %v2211_v23 = vpop.f32.mrf.mxu1 }
 0xb2b   :  { %v2262_v43 = vmax.f32 %v2220_v7, 0.0  ;;  %v2212_v56 = vadd.f32 %v2526_v2, %v2211_v23 }
 0xb2c   :  { %v3171_v47 = vpop.f32.mrf.mxu1 }
 0xb2d   :  { %v2233_v24 = vadd.f32 %v3171_v47, %v2526_v2  ;;  %v2275_v8 = vpack.c.bf16 %v2262_v43, %v2261_v63  ;;  %v2260_v11 = vmax.f32 %v2212_v56, 0.0 }
 0xb2e   :  { %v2224_v37 = vpop.f32.mrf.mxu1 }
 0xb2f   :  { %v2265_v30 = vmax.f32 %v2233_v24, 0.0  ;;  %v2225_v53 = vadd.f32 %v2526_v2, %v2224_v37  ;;  %v2274_v4 = vpack.c.bf16 %v2260_v11, %v2259_v25 }
 0xb30   :  { %v3172_v20 = vpop.f32.mrf.mxu1 }
 0xb31   :  { %v2236_v50 = vadd.f32 %v3172_v20, %v2526_v2  ;;  %v2263_v1 = vmax.f32 %v2225_v53, 0.0 }
 0xb32   :  { %v2227_v19 = vpop.f32.mrf.mxu1 }
 0xb33   :  { %v2266_v45 = vmax.f32 %v2236_v50, 0.0  ;;  %v2228_v44 = vadd.f32 %v2526_v2, %v2227_v19 }
 0xb34   :  { %v3175_v46 = vpop.f32.mrf.mxu1 }
 0xb35   :  { %v2249_v14 = vadd.f32 %v3175_v46, %v2526_v2  ;;  %v2277_v17 = vpack.c.bf16 %v2266_v45, %v2265_v30  ;;  %v2264_v59 = vmax.f32 %v2228_v44, 0.0 }
 0xb36   :  { %v2240_v51 = vpop.f32.mrf.mxu1 }
 0xb37   :  { %v2269_v41 = vmax.f32 %v2249_v14, 0.0  ;;  %v2241_v3 = vadd.f32 %v2526_v2, %v2240_v51  ;;  %v2276_v36 = vpack.c.bf16 %v2264_v59, %v2263_v1 }
 0xb38   :  { %v3176_v28 = vpop.f32.mrf.mxu1 }
 0xb39   :  { %v2252_v48 = vadd.f32 %v3176_v28, %v2526_v2  ;;  %v2267_v26 = vmax.f32 %v2241_v3, 0.0 }
 0xb3a   :  { %v2243_v18 = vpop.f32.mrf.mxu1 }
 0xb3b   :  { %v2270_v27 = vmax.f32 %v2252_v48, 0.0  ;;  %v2244_v39 = vadd.f32 %v2526_v2, %v2243_v18 }
 0xb3d   :  { %v2279_v10 = vpack.c.bf16 %v2270_v27, %v2269_v41  ;;  %v2268_v0 = vmax.f32 %v2244_v39, 0.0 }
 0xb3f   :  { %3178 = vmatpush3.bf16.msra.mxu0 %v2279_v10  ;;  %v2278_v42 = vpack.c.bf16 %v2268_v0, %v2267_v26 }
 0xb40   :  { %3179 = vmatprep.subr.bf16.mxu0 %v3514_v61 }
 0xb43   :  { %3180 = vmatpush3.bf16.msra.mxu0 %v2278_v42 }
 0xb44   :  { %3181 = vmatprep.subr.bf16.mxu0 %v3514_v61 }
 0xb47   :  { %3182 = vmatpush3.bf16.msra.mxu0 %v2277_v17 }
 0xb48   :  { %3183 = vmatprep.subr.bf16.mxu0 %v3514_v61 }
 0xb4b   :  { %3184 = vmatpush3.bf16.msra.mxu0 %v2276_v36 }
 0xb4c   :  { %3185 = vmatprep.subr.bf16.mxu0 %v3514_v61 }
 0xb4f   :  { %3186 = vmatpush3.bf16.msra.mxu0 %v2275_v8 }
 0xb50   :  { %3187 = vmatprep.subr.bf16.mxu0 %v3514_v61 }
 0xb53   :  { %3188 = vmatpush3.bf16.msra.mxu0 %v2274_v4 }
 0xb54   :  { %3189 = vmatprep.subr.bf16.mxu0 %v3514_v61 }
 0xb57   :  { %3190 = vmatpush3.bf16.msra.mxu0 %v2273_v58 }
 0xb58   :  { %3191 = vmatprep.subr.bf16.mxu0 %v3514_v61  ;;  %v2535_v61 = vld [vmem:[%s4137_s12] ss:$0 sm:$0xff] }
 0xb5b   :  { %3192 = vmatpush3.bf16.msra.mxu0 %v2272_v12 }
 0xb5e   :  { %3194 = vmatmul.mubr.bf16.vlgmr.msra.gmra.mxu0 %v2271_v62 }
 0xc1e   :  { %v2314_v52 = vpop.f32.mrf.mxu0 }
 0xc1f   :  { %v2326_v31 = vmul.f32 %v2324_v32, %v2314_v52 }
 0xc20   :  { %v3195_v21 = vpop.f32.mrf.mxu0 }
 0xc21   :  { %v2327_v35 = vpack.c.bf16 %v2326_v31, %v2326_v31 }
 0xc22   :  { %v2317_v9 = vpop.f32.mrf.mxu0 }
 0xc23   :  { %3214 = vmatmul.mubr.bf16.vlgmr.msra.gmra.mxu1 %v2327_v35 }
 0xc24   :  { %v3196_v6 = vpop.f32.mrf.mxu0 }
 0xce3   :  { %v2433_v29 = vpop.f32.mrf.mxu1 }
 0xce4   :  { %v2434_v33 = vadd.f32 %v2535_v61, %v2433_v29 }
 0xce5   :  { %v3215_v15 = vpop.f32.mrf.mxu1 }
 0xce6   :  { %2439 = vst [vmem:[#allocation16] sm:$0xff] %v2434_v33 }
 0xce7   :  { %v2436_v22 = vpop.f32.mrf.mxu1 }
 0xce8   :  { %3481 = shalt.err (!%p3478_p11)
}
 0xce9   :  { %2449 = dma.vmem_to_hbm [thread:$0]  %s2447_s26, 128, %s4138_s13, [#allocation4]   ;;  %v3216_v23 = vpop.f32.mrf.mxu1 }
 0xcea   :  { %3500 = dma.done.wait [#allocation4], 128  }
 0xceb   :  { %3501 = vsyncadd [#allocation4], 4294967168 }
 0xcec   :  { %2453 = vsyncpa [#allocation3], 1 }
 0xced   :  { %2454 = vsyncpa [#allocation8], 1 }
 0xcee   :  { %2455 = vsyncpa [#allocation11], 1 }
 0xcef   :  { %2456 = vsyncpa [#allocation14], 1 }
 0xcf0   :  { %2457 = vsyncpa [#allocation4], 1 }
 0xcf1   :  { %2458 = vsyncpa [#allocation5], 1 }

</bundles_post_ra>
